<compile_context>
chip_gen: v7x
topology: tpu7x:2x2x1
jax: 0.10.0
libtpu: 0.0.40
codegen_flags: <defaults>
</compile_context>

<pallas_src>
import math
import functools

import jax
import jax.numpy as jnp
from jax.experimental import pallas as pl
from jax.experimental.pallas import tpu as pltpu


LANE = 128


def round_up(x, m):
    return ((x + m - 1) // m) * m


def cdiv(a, b):
    return -(-a // b)


# ----------------------------------------------------------------------------
# Pallas kernel: fused (masked depthwise MAC) + pointwise matmul + bias
#                (+ fused 1x1-conv residual) (+ ReLU) (+ log_softmax)
# ----------------------------------------------------------------------------
def make_tcs_kernel(*, K, stride, dilation, pad, TT, relu, has_dw, has_res,
                    logsoftmax):
    # Tap k reads phase p_k of the stride-deinterleaved input at row offset q_k.
    taps = [((k * dilation) % stride, (k * dilation) // stride, k)
            for k in range(K)]

    def body(lens_ref, *refs):
        it = iter(refs)
        x_ref = next(it)                       # (stride, T_ph, Cin)
        dw_ref = next(it) if has_dw else None  # (K, Cin)
        pw_ref = next(it)                      # (Cin, Cout) bf16 (BN scale folded)
        b_ref = next(it)                       # (1, Cout)
        if has_res:
            rx_ref = next(it)                  # (Tr, Cr)
            rpw_ref = next(it)                 # (Cr, Cout) bf16
            rb_ref = next(it)                  # (1, Cout)
        o_ref = next(it)                       # (TT, Cout)

        b = pl.program_id(0)
        t0 = pl.multiple_of(pl.program_id(1) * TT, TT)
        lval = lens_ref[b]                     # valid input length (SMEM scalar)
        limit = lval + pad                     # cutoff in conv-padded coordinates

        rows = jax.lax.broadcasted_iota(jnp.int32, (TT, 1), 0)
        base = (t0 + rows) * stride            # padded position of output row, tap 0

        dwv = dw_ref[...] if has_dw else None
        acc = None
        for (p_k, q_k, k) in taps:
            tap = x_ref[p_k, pl.ds(t0 + q_k, TT), :]          # (TT, Cin)
            # MaskedConv1d: zero input positions >= lens (fused, no extra pass).
            tap = jnp.where(base + (k * dilation) < limit, tap, 0.0)
            if has_dw:
                tap = tap * dwv[k:k + 1, :]
            acc = tap if acc is None else acc + tap

        # Pointwise conv on the MXU: bf16 operands, f32 accumulation.
        y = jnp.dot(acc.astype(jnp.bfloat16), pw_ref[...],
                    preferred_element_type=jnp.float32)
        y = y + b_ref[...]                      # folded BN / conv bias

        if has_res:
            # Fused 1x1-conv residual branch on the block input (same time tile).
            r = rx_ref[pl.ds(t0, TT), :]
            r = jnp.where((t0 + rows) < lval, r, 0.0)
            y = y + jnp.dot(r.astype(jnp.bfloat16), rpw_ref[...],
                            preferred_element_type=jnp.float32) + rb_ref[...]

        if relu:
            y = jnp.maximum(y, 0.0)
        if logsoftmax:
            m = jnp.max(y, axis=-1, keepdims=True)
            e = y - m
            y = e - jnp.log(jnp.sum(jnp.exp(e), axis=-1, keepdims=True))

        o_ref[...] = y.astype(o_ref.dtype)

    return body


# ----------------------------------------------------------------------------
# Layer wrapper: padding / phase de-interleave glue + pallas_call
# ----------------------------------------------------------------------------
def tcs_layer(x, T_true, lens, p, *, K, stride=1, dilation=1, pad=0,
              relu=True, fused_res=None, logsoftmax=False, time_tile=512):
    """One fused TCS conv layer.  x: (B, T_phys, Cin_pad) -> (B, Tout_phys, Cout_pad)."""
    B, T_phys, Cin = x.shape
    Cout = p['pw'].shape[1]

    t_out = (T_true + 2 * pad - dilation * (K - 1) - 1) // stride + 1
    TT = min(time_tile, t_out)
    if TT != t_out:
        TT = max(8, (TT // 8) * 8)
    n_tiles = cdiv(t_out, TT)

    # Total padded-time rows needed so every in-kernel tap read is in bounds.
    reads_needed = (n_tiles * TT - 1) * stride + (K - 1) * dilation + 1
    total = max(reads_needed, T_phys + pad)
    total = round_up(total, 8 * stride)        # phase length multiple of 8
    pad_right = total - T_phys - pad
    xp = jnp.pad(x, ((0, 0), (pad, pad_right), (0, 0)))

    T_ph = total // stride
    if stride > 1:
        # De-interleave into `stride` phases once (1x the data, no K-fold im2col).
        xp = xp.reshape(B, T_ph, stride, Cin).transpose(0, 2, 1, 3)
    else:
        xp = xp.reshape(B, 1, T_ph, Cin)

    has_dw = 'dw' in p
    in_specs = [pl.BlockSpec((None, stride, T_ph, Cin), lambda b, t, L: (b, 0, 0, 0))]
    args = [xp]
    if has_dw:
        in_specs.append(pl.BlockSpec((K, Cin), lambda b, t, L: (0, 0)))
        args.append(p['dw'])
    in_specs += [pl.BlockSpec((Cin, Cout), lambda b, t, L: (0, 0)),
                 pl.BlockSpec((1, Cout), lambda b, t, L: (0, 0))]
    args += [p['pw'], p['bias']]

    has_res = fused_res is not None
    if has_res:
        r_x, r_p = fused_res
        Tr, Cr = r_x.shape[1], r_x.shape[2]
        r_alloc = max(round_up(n_tiles * TT, 8), Tr)
        if r_alloc > Tr:
            r_x = jnp.pad(r_x, ((0, 0), (0, r_alloc - Tr), (0, 0)))
        in_specs += [pl.BlockSpec((None, r_alloc, Cr), lambda b, t, L: (b, 0, 0)),
                     pl.BlockSpec((Cr, Cout), lambda b, t, L: (0, 0)),
                     pl.BlockSpec((1, Cout), lambda b, t, L: (0, 0))]
        args += [r_x, r_p['pw'], r_p['bias']]

    kernel = make_tcs_kernel(K=K, stride=stride, dilation=dilation, pad=pad, TT=TT,
                             relu=relu, has_dw=has_dw, has_res=has_res,
                             logsoftmax=logsoftmax)

    grid_spec = pltpu.PrefetchScalarGridSpec(
        num_scalar_prefetch=1,
        grid=(B, n_tiles),
        in_specs=in_specs,
        out_specs=pl.BlockSpec((None, TT, Cout), lambda b, t, L: (b, t, 0)),
    )

    out = pl.pallas_call(
        kernel,
        grid_spec=grid_spec,
        out_shape=jax.ShapeDtypeStruct((B, n_tiles * TT, Cout), jnp.float32),
        compiler_params=pltpu.CompilerParams(
            dimension_semantics=("parallel", "parallel")),
    )(lens.astype(jnp.int32), *args)

    lens_out = (lens + 2 * pad - dilation * (K - 1) - 1) // stride + 1
    return out, t_out, lens_out


# ----------------------------------------------------------------------------
# Parameter construction (deterministic, in-script; BN scale folded into pw)
# ----------------------------------------------------------------------------
def _kaiming_uniform(key, shape, fan_in):
    bound = math.sqrt(6.0 / fan_in)
    return jax.random.uniform(key, shape, jnp.float32, -bound, bound)


def make_tcs_params(key, K, cin, cout, *, depthwise=True, conv_bias=False,
                    bias_pad_value=0.0, eps=1e-3):
    # TODO(synk): BN eps fixed to NeMo's 1e-3 (PyTorch default is 1e-5).
    cin_p, cout_p = round_up(cin, LANE), round_up(cout, LANE)
    ks = jax.random.split(key, 6)

    pw = _kaiming_uniform(ks[1], (cin, cout), cin)
    if conv_bias:
        bound = 1.0 / math.sqrt(cin)
        bias = jax.random.uniform(ks[2], (cout,), jnp.float32, -bound, bound)
        scale = jnp.ones((cout,), jnp.float32)
    else:
        gamma = jax.random.uniform(ks[3], (cout,), jnp.float32, 0.9, 1.1)
        beta = 0.1 * jax.random.normal(ks[4], (cout,), jnp.float32)
        mean = 0.05 * jax.random.normal(ks[5], (cout,), jnp.float32)
        var = 1.0 + jax.random.uniform(ks[2], (cout,), jnp.float32, 0.0, 0.2)
        scale = gamma / jnp.sqrt(var + eps)
        bias = beta - mean * scale

    pw_folded = (pw * scale[None, :]).astype(jnp.bfloat16)     # fold BN scale offline
    pw_p = jnp.zeros((cin_p, cout_p), jnp.bfloat16).at[:cin, :cout].set(pw_folded)
    bias_p = jnp.full((1, cout_p), bias_pad_value, jnp.float32).at[0, :cout].set(bias)

    params = {'pw': pw_p, 'bias': bias_p}
    if depthwise:
        dw = _kaiming_uniform(ks[0], (K, cin), K)
        params['dw'] = jnp.zeros((K, cin_p), jnp.float32).at[:, :cin].set(dw)
    return params


def init_params(key, f_in=8, c1=16, cb=16, c2=32, c3=32, num_classes=10,
                num_blocks=2):
    keys = jax.random.split(key, 4 + num_blocks)
    params = {
        'c1': make_tcs_params(keys[0], 3, f_in, c1),
        'blocks': [],
        'c2': make_tcs_params(keys[1], 3, cb, c2),
        'c3': make_tcs_params(keys[2], 1, c2, c3, depthwise=False),
        'dec': make_tcs_params(keys[3], 1, c3, num_classes, depthwise=False,
                               conv_bias=True, bias_pad_value=-1e30),
    }
    cin = c1
    for i in range(num_blocks):
        kb = jax.random.split(keys[4 + i], 3)
        params['blocks'].append({
            'sub1': make_tcs_params(kb[0], 3, cin, cb),
            'sub2': make_tcs_params(kb[1], 3, cb, cb),
            'res': make_tcs_params(kb[2], 1, cin, cb, depthwise=False),
        })
        cin = cb
    return params


# ----------------------------------------------------------------------------
# QuartzNet forward:  (x, lens) -> (log_probs, lens_out)
# ----------------------------------------------------------------------------
def quartznet_forward(params, x, lens, *, num_classes=10):
    # x: (B, F, T) as in PyTorch NCW; kernels run channels-last with 128-padded C.
    B, F, T = x.shape
    h = jnp.transpose(x, (0, 2, 1))
    Fp = round_up(F, LANE)
    if Fp > F:
        h = jnp.pad(h, ((0, 0), (0, 0), (0, Fp - F)))
    lens = lens.astype(jnp.int32)
    T_true = T

    # C1 prologue: K=3, stride 2 (handled via phase de-interleave, no im2col).
    h, T_true, lens = tcs_layer(h, T_true, lens, params['c1'], K=3, stride=2, pad=1)

    # QuartzNet blocks; the 1x1 residual conv is fused into the sub2 kernel.
    for blk in params['blocks']:
        block_in = h
        h, T_true, lens = tcs_layer(h, T_true, lens, blk['sub1'], K=3, pad=1)
        h, T_true, lens = tcs_layer(h, T_true, lens, blk['sub2'], K=3, pad=1,
                                    fused_res=(block_in, blk['res']))

    # Epilogue: dilated C2, 1x1 C3.
    h, T_true, lens = tcs_layer(h, T_true, lens, params['c2'], K=3, dilation=2, pad=2)
    h, T_true, lens = tcs_layer(h, T_true, lens, params['c3'], K=1)

    # Decoder: 1x1 conv + bias + log_softmax (padded classes forced to -inf bias).
    logp, T_true, lens = tcs_layer(h, T_true, lens, params['dec'], K=1,
                                   relu=False, logsoftmax=True)

    return logp[:, :T_true, :num_classes], lens


# ----------------------------------------------------------------------------
# Main
# ----------------------------------------------------------------------------
if __name__ == "__main__":
    key = jax.random.PRNGKey(0)
    kx, kp = jax.random.split(key)

    B, F, T = 2, 8, 16
    num_classes = 10

    x = jax.random.normal(kx, (B, F, T), jnp.float32)       # (B, features, time)
    lens = jnp.array([16, 12], jnp.int32)

    params = init_params(kp, f_in=F, num_classes=num_classes)

    fwd = jax.jit(functools.partial(quartznet_forward, num_classes=num_classes))
    logp, lens_out = fwd(params, x, lens)
    jax.block_until_ready((logp, lens_out))

    assert logp.shape == (B, 8, num_classes), logp.shape
    assert lens_out.shape == (B,), lens_out.shape
    print("KERNEL_OK")
</pallas_src>

<mosaic_0001>
module attributes {stable_mosaic.version = 11 : i64} {
  func.func @body(%arg0: i32, %arg1: i32, %arg2: memref<2xi32, #tpu.memory_space<smem>>, %arg3: memref<1x1x16x128xf32, #tpu.memory_space<vmem>>, %arg4: memref<3x128xf32, #tpu.memory_space<vmem>>, %arg5: memref<128x128xbf16, #tpu.memory_space<vmem>>, %arg6: memref<1x128xf32, #tpu.memory_space<vmem>>, %arg7: memref<1x8x128xf32, #tpu.memory_space<vmem>>) attributes {dimension_semantics = [#tpu.dimension_semantics<parallel>, #tpu.dimension_semantics<parallel>], iteration_bounds = array<i64: 2, 1>, scalar_prefetch = 1 : i64, scratch_operands = 0 : i64, tpu.core_type = #tpu.core_type<tc>, window_params = [{transform_indices = @transform_0, window_bounds = array<i64: 1, 1, 16, 128>}, {pipeline_mode = #tpu.pipeline_mode<synchronous>, transform_indices = @transform_1, window_bounds = array<i64: 3, 128>}, {pipeline_mode = #tpu.pipeline_mode<synchronous>, transform_indices = @transform_2, window_bounds = array<i64: 128, 128>}, {pipeline_mode = #tpu.pipeline_mode<synchronous>, transform_indices = @transform_3, window_bounds = array<i64: 1, 128>}, {transform_indices = @transform_4, window_bounds = array<i64: 1, 8, 128>}]} {
    %c8_i32 = arith.constant 8 : i32
    %0 = arith.muli %arg1, %c8_i32 : i32
    %1 = tpu.assume_multiple %0, 8 : i32
    %2 = arith.index_cast %arg0 : i32 to index
    %3 = memref.load %arg2[%2] : memref<2xi32, #tpu.memory_space<smem>>
    %c1_i32 = arith.constant 1 : i32
    %4 = arith.addi %3, %c1_i32 : i32
    %5 = tpu.iota {dimensions = array<i32: 0>} : vector<8x1xi32>
    %6 = vector.broadcast %1 : i32 to vector<8x1xi32>
    %7 = arith.addi %6, %5 : vector<8x1xi32>
    %c1_i32_0 = arith.constant 1 : i32
    %8 = vector.broadcast %c1_i32_0 : i32 to vector<8x1xi32>
    %9 = arith.muli %7, %8 : vector<8x1xi32>
    %c0 = arith.constant 0 : index
    %c0_1 = arith.constant 0 : index
    %10 = vector.load %arg4[%c0, %c0_1] : memref<3x128xf32, #tpu.memory_space<vmem>>, vector<3x128xf32>
    %c0_i32 = arith.constant 0 : i32
    %11 = arith.addi %1, %c0_i32 : i32
    %c0_2 = arith.constant 0 : index
    %c0_3 = arith.constant 0 : index
    %12 = arith.index_cast %11 : i32 to index
    %c0_4 = arith.constant 0 : index
    %13 = vector.load %arg3[%c0_2, %c0_3, %12, %c0_4] : memref<1x1x16x128xf32, #tpu.memory_space<vmem>>, vector<1x1x8x128xf32>
    %14 = vector.shape_cast %13 : vector<1x1x8x128xf32> to vector<8x128xf32>
    %c0_i32_5 = arith.constant 0 : i32
    %15 = vector.broadcast %c0_i32_5 : i32 to vector<8x1xi32>
    %16 = arith.addi %9, %15 : vector<8x1xi32>
    %17 = vector.broadcast %4 : i32 to vector<8x1xi32>
    %18 = arith.cmpi slt, %16, %17 : vector<8x1xi32>
    %cst = arith.constant 0.000000e+00 : f32
    %19 = vector.shape_cast %18 : vector<8x1xi1> to vector<8x1xi1>
    %20 = vector.broadcast %19 : vector<8x1xi1> to vector<8x128xi1>
    %21 = vector.broadcast %cst : f32 to vector<8x128xf32>
    %22 = arith.select %20, %14, %21 : vector<8x128xi1>, vector<8x128xf32>
    %23 = vector.extract_strided_slice %10 {offsets = [0, 0], sizes = [1, 128], strides = [1, 1]} : vector<3x128xf32> to vector<1x128xf32>
    %24 = vector.broadcast %23 : vector<1x128xf32> to vector<8x128xf32>
    %25 = arith.mulf %22, %24 : vector<8x128xf32>
    %c1_i32_6 = arith.constant 1 : i32
    %26 = arith.addi %1, %c1_i32_6 : i32
    %c0_7 = arith.constant 0 : index
    %c0_8 = arith.constant 0 : index
    %27 = arith.index_cast %26 : i32 to index
    %c0_9 = arith.constant 0 : index
    %28 = vector.load %arg3[%c0_7, %c0_8, %27, %c0_9] : memref<1x1x16x128xf32, #tpu.memory_space<vmem>>, vector<1x1x8x128xf32>
    %29 = vector.shape_cast %28 : vector<1x1x8x128xf32> to vector<8x128xf32>
    %c1_i32_10 = arith.constant 1 : i32
    %30 = vector.broadcast %c1_i32_10 : i32 to vector<8x1xi32>
    %31 = arith.addi %9, %30 : vector<8x1xi32>
    %32 = vector.broadcast %4 : i32 to vector<8x1xi32>
    %33 = arith.cmpi slt, %31, %32 : vector<8x1xi32>
    %cst_11 = arith.constant 0.000000e+00 : f32
    %34 = vector.shape_cast %33 : vector<8x1xi1> to vector<8x1xi1>
    %35 = vector.broadcast %34 : vector<8x1xi1> to vector<8x128xi1>
    %36 = vector.broadcast %cst_11 : f32 to vector<8x128xf32>
    %37 = arith.select %35, %29, %36 : vector<8x128xi1>, vector<8x128xf32>
    %38 = vector.extract_strided_slice %10 {offsets = [1, 0], sizes = [1, 128], strides = [1, 1]} : vector<3x128xf32> to vector<1x128xf32>
    %39 = vector.broadcast %38 : vector<1x128xf32> to vector<8x128xf32>
    %40 = arith.mulf %37, %39 : vector<8x128xf32>
    %41 = arith.addf %25, %40 : vector<8x128xf32>
    %c2_i32 = arith.constant 2 : i32
    %42 = arith.addi %1, %c2_i32 : i32
    %c0_12 = arith.constant 0 : index
    %c0_13 = arith.constant 0 : index
    %43 = arith.index_cast %42 : i32 to index
    %c0_14 = arith.constant 0 : index
    %44 = vector.load %arg3[%c0_12, %c0_13, %43, %c0_14] : memref<1x1x16x128xf32, #tpu.memory_space<vmem>>, vector<1x1x8x128xf32>
    %45 = vector.shape_cast %44 : vector<1x1x8x128xf32> to vector<8x128xf32>
    %c2_i32_15 = arith.constant 2 : i32
    %46 = vector.broadcast %c2_i32_15 : i32 to vector<8x1xi32>
    %47 = arith.addi %9, %46 : vector<8x1xi32>
    %48 = vector.broadcast %4 : i32 to vector<8x1xi32>
    %49 = arith.cmpi slt, %47, %48 : vector<8x1xi32>
    %cst_16 = arith.constant 0.000000e+00 : f32
    %50 = vector.shape_cast %49 : vector<8x1xi1> to vector<8x1xi1>
    %51 = vector.broadcast %50 : vector<8x1xi1> to vector<8x128xi1>
    %52 = vector.broadcast %cst_16 : f32 to vector<8x128xf32>
    %53 = arith.select %51, %45, %52 : vector<8x128xi1>, vector<8x128xf32>
    %54 = vector.extract_strided_slice %10 {offsets = [2, 0], sizes = [1, 128], strides = [1, 1]} : vector<3x128xf32> to vector<1x128xf32>
    %55 = vector.broadcast %54 : vector<1x128xf32> to vector<8x128xf32>
    %56 = arith.mulf %53, %55 : vector<8x128xf32>
    %57 = arith.addf %41, %56 : vector<8x128xf32>
    %58 = arith.truncf %57 : vector<8x128xf32> to vector<8x128xbf16>
    %c0_17 = arith.constant 0 : index
    %c0_18 = arith.constant 0 : index
    %59 = vector.load %arg5[%c0_17, %c0_18] : memref<128x128xbf16, #tpu.memory_space<vmem>>, vector<128x128xbf16>
    %cst_19 = arith.constant dense<0.000000e+00> : vector<8x128xf32>
    %60 = tpu.matmul %58, %59, %cst_19 {dimension_numbers = #tpu.dot_dimension_numbers<[1], [0], [0], [1], [0, 0, 1, 1], [], []>} : vector<8x128xbf16>, vector<128x128xbf16>, vector<8x128xf32> -> vector<8x128xf32>
    %c0_20 = arith.constant 0 : index
    %c0_21 = arith.constant 0 : index
    %61 = vector.load %arg6[%c0_20, %c0_21] : memref<1x128xf32, #tpu.memory_space<vmem>>, vector<1x128xf32>
    %62 = vector.broadcast %61 : vector<1x128xf32> to vector<8x128xf32>
    %63 = arith.addf %60, %62 : vector<8x128xf32>
    %cst_22 = arith.constant 0.000000e+00 : f32
    %64 = vector.broadcast %cst_22 : f32 to vector<8x128xf32>
    %65 = arith.maximumf %63, %64 : vector<8x128xf32>
    %c0_23 = arith.constant 0 : index
    %c0_24 = arith.constant 0 : index
    %c0_25 = arith.constant 0 : index
    %66 = vector.load %arg7[%c0_23, %c0_24, %c0_25] : memref<1x8x128xf32, #tpu.memory_space<vmem>>, vector<1x8x128xf32>
    %67 = vector.shape_cast %66 : vector<1x8x128xf32> to vector<8x128xf32>
    %68 = vector.shape_cast %65 : vector<8x128xf32> to vector<1x8x128xf32>
    tpu.vector_store %arg7[%c0_23, %c0_24, %c0_25], %68 {strides = array<i32>} : memref<1x8x128xf32, #tpu.memory_space<vmem>>, vector<1x8x128xf32>,
    return
  }
  func.func @transform_0(%arg0: i32, %arg1: i32, %arg2: memref<2xi32, #tpu.memory_space<smem>>) -> (i32, i32, i32, i32) {
    %c0_i32 = arith.constant 0 : i32
    %c0_i32_0 = arith.constant 0 : i32
    %c0_i32_1 = arith.constant 0 : i32
    %c0_i32_2 = arith.constant 0 : i32
    return %arg0, %c0_i32, %c0_i32_0, %c0_i32_1 : i32, i32, i32, i32
  }
  func.func @transform_1(%arg0: i32, %arg1: i32, %arg2: memref<2xi32, #tpu.memory_space<smem>>) -> (i32, i32) {
    %c0_i32 = arith.constant 0 : i32
    %c0_i32_0 = arith.constant 0 : i32
    %c0_i32_1 = arith.constant 0 : i32
    return %c0_i32, %c0_i32_0 : i32, i32
  }
  func.func @transform_2(%arg0: i32, %arg1: i32, %arg2: memref<2xi32, #tpu.memory_space<smem>>) -> (i32, i32) {
    %c0_i32 = arith.constant 0 : i32
    %c0_i32_0 = arith.constant 0 : i32
    %c0_i32_1 = arith.constant 0 : i32
    return %c0_i32, %c0_i32_0 : i32, i32
  }
  func.func @transform_3(%arg0: i32, %arg1: i32, %arg2: memref<2xi32, #tpu.memory_space<smem>>) -> (i32, i32) {
    %c0_i32 = arith.constant 0 : i32
    %c0_i32_0 = arith.constant 0 : i32
    %c0_i32_1 = arith.constant 0 : i32
    return %c0_i32, %c0_i32_0 : i32, i32
  }
  func.func @transform_4(%arg0: i32, %arg1: i32, %arg2: memref<2xi32, #tpu.memory_space<smem>>) -> (i32, i32, i32) {
    %c0_i32 = arith.constant 0 : i32
    %c0_i32_0 = arith.constant 0 : i32
    return %arg0, %arg1, %c0_i32 : i32, i32, i32
  }
}

module attributes {stable_mosaic.version = 11 : i64} {
  func.func @body(%arg0: i32, %arg1: i32, %arg2: memref<2xi32, #tpu.memory_space<smem>>, %arg3: memref<1x2x16x128xf32, #tpu.memory_space<vmem>>, %arg4: memref<3x128xf32, #tpu.memory_space<vmem>>, %arg5: memref<128x128xbf16, #tpu.memory_space<vmem>>, %arg6: memref<1x128xf32, #tpu.memory_space<vmem>>, %arg7: memref<1x8x128xf32, #tpu.memory_space<vmem>>) attributes {dimension_semantics = [#tpu.dimension_semantics<parallel>, #tpu.dimension_semantics<parallel>], iteration_bounds = array<i64: 2, 1>, scalar_prefetch = 1 : i64, scratch_operands = 0 : i64, tpu.core_type = #tpu.core_type<tc>, window_params = [{transform_indices = @transform_0, window_bounds = array<i64: 1, 2, 16, 128>}, {pipeline_mode = #tpu.pipeline_mode<synchronous>, transform_indices = @transform_1, window_bounds = array<i64: 3, 128>}, {pipeline_mode = #tpu.pipeline_mode<synchronous>, transform_indices = @transform_2, window_bounds = array<i64: 128, 128>}, {pipeline_mode = #tpu.pipeline_mode<synchronous>, transform_indices = @transform_3, window_bounds = array<i64: 1, 128>}, {transform_indices = @transform_4, window_bounds = array<i64: 1, 8, 128>}]} {
    %c8_i32 = arith.constant 8 : i32
    %0 = arith.muli %arg1, %c8_i32 : i32
    %1 = tpu.assume_multiple %0, 8 : i32
    %2 = arith.index_cast %arg0 : i32 to index
    %3 = memref.load %arg2[%2] : memref<2xi32, #tpu.memory_space<smem>>
    %c1_i32 = arith.constant 1 : i32
    %4 = arith.addi %3, %c1_i32 : i32
    %5 = tpu.iota {dimensions = array<i32: 0>} : vector<8x1xi32>
    %6 = vector.broadcast %1 : i32 to vector<8x1xi32>
    %7 = arith.addi %6, %5 : vector<8x1xi32>
    %c2_i32 = arith.constant 2 : i32
    %8 = vector.broadcast %c2_i32 : i32 to vector<8x1xi32>
    %9 = arith.muli %7, %8 : vector<8x1xi32>
    %c0 = arith.constant 0 : index
    %c0_0 = arith.constant 0 : index
    %10 = vector.load %arg4[%c0, %c0_0] : memref<3x128xf32, #tpu.memory_space<vmem>>, vector<3x128xf32>
    %c0_i32 = arith.constant 0 : i32
    %11 = arith.addi %1, %c0_i32 : i32
    %c0_1 = arith.constant 0 : index
    %c0_2 = arith.constant 0 : index
    %12 = arith.index_cast %11 : i32 to index
    %c0_3 = arith.constant 0 : index
    %13 = vector.load %arg3[%c0_1, %c0_2, %12, %c0_3] : memref<1x2x16x128xf32, #tpu.memory_space<vmem>>, vector<1x1x8x128xf32>
    %14 = vector.shape_cast %13 : vector<1x1x8x128xf32> to vector<8x128xf32>
    %c0_i32_4 = arith.constant 0 : i32
    %15 = vector.broadcast %c0_i32_4 : i32 to vector<8x1xi32>
    %16 = arith.addi %9, %15 : vector<8x1xi32>
    %17 = vector.broadcast %4 : i32 to vector<8x1xi32>
    %18 = arith.cmpi slt, %16, %17 : vector<8x1xi32>
    %cst = arith.constant 0.000000e+00 : f32
    %19 = vector.shape_cast %18 : vector<8x1xi1> to vector<8x1xi1>
    %20 = vector.broadcast %19 : vector<8x1xi1> to vector<8x128xi1>
    %21 = vector.broadcast %cst : f32 to vector<8x128xf32>
    %22 = arith.select %20, %14, %21 : vector<8x128xi1>, vector<8x128xf32>
    %23 = vector.extract_strided_slice %10 {offsets = [0, 0], sizes = [1, 128], strides = [1, 1]} : vector<3x128xf32> to vector<1x128xf32>
    %24 = vector.broadcast %23 : vector<1x128xf32> to vector<8x128xf32>
    %25 = arith.mulf %22, %24 : vector<8x128xf32>
    %c0_i32_5 = arith.constant 0 : i32
    %26 = arith.addi %1, %c0_i32_5 : i32
    %c0_6 = arith.constant 0 : index
    %c1 = arith.constant 1 : index
    %27 = arith.index_cast %26 : i32 to index
    %c0_7 = arith.constant 0 : index
    %28 = vector.load %arg3[%c0_6, %c1, %27, %c0_7] : memref<1x2x16x128xf32, #tpu.memory_space<vmem>>, vector<1x1x8x128xf32>
    %29 = vector.shape_cast %28 : vector<1x1x8x128xf32> to vector<8x128xf32>
    %c1_i32_8 = arith.constant 1 : i32
    %30 = vector.broadcast %c1_i32_8 : i32 to vector<8x1xi32>
    %31 = arith.addi %9, %30 : vector<8x1xi32>
    %32 = vector.broadcast %4 : i32 to vector<8x1xi32>
    %33 = arith.cmpi slt, %31, %32 : vector<8x1xi32>
    %cst_9 = arith.constant 0.000000e+00 : f32
    %34 = vector.shape_cast %33 : vector<8x1xi1> to vector<8x1xi1>
    %35 = vector.broadcast %34 : vector<8x1xi1> to vector<8x128xi1>
    %36 = vector.broadcast %cst_9 : f32 to vector<8x128xf32>
    %37 = arith.select %35, %29, %36 : vector<8x128xi1>, vector<8x128xf32>
    %38 = vector.extract_strided_slice %10 {offsets = [1, 0], sizes = [1, 128], strides = [1, 1]} : vector<3x128xf32> to vector<1x128xf32>
    %39 = vector.broadcast %38 : vector<1x128xf32> to vector<8x128xf32>
    %40 = arith.mulf %37, %39 : vector<8x128xf32>
    %41 = arith.addf %25, %40 : vector<8x128xf32>
    %c1_i32_10 = arith.constant 1 : i32
    %42 = arith.addi %1, %c1_i32_10 : i32
    %c0_11 = arith.constant 0 : index
    %c0_12 = arith.constant 0 : index
    %43 = arith.index_cast %42 : i32 to index
    %c0_13 = arith.constant 0 : index
    %44 = vector.load %arg3[%c0_11, %c0_12, %43, %c0_13] : memref<1x2x16x128xf32, #tpu.memory_space<vmem>>, vector<1x1x8x128xf32>
    %45 = vector.shape_cast %44 : vector<1x1x8x128xf32> to vector<8x128xf32>
    %c2_i32_14 = arith.constant 2 : i32
    %46 = vector.broadcast %c2_i32_14 : i32 to vector<8x1xi32>
    %47 = arith.addi %9, %46 : vector<8x1xi32>
    %48 = vector.broadcast %4 : i32 to vector<8x1xi32>
    %49 = arith.cmpi slt, %47, %48 : vector<8x1xi32>
    %cst_15 = arith.constant 0.000000e+00 : f32
    %50 = vector.shape_cast %49 : vector<8x1xi1> to vector<8x1xi1>
    %51 = vector.broadcast %50 : vector<8x1xi1> to vector<8x128xi1>
    %52 = vector.broadcast %cst_15 : f32 to vector<8x128xf32>
    %53 = arith.select %51, %45, %52 : vector<8x128xi1>, vector<8x128xf32>
    %54 = vector.extract_strided_slice %10 {offsets = [2, 0], sizes = [1, 128], strides = [1, 1]} : vector<3x128xf32> to vector<1x128xf32>
    %55 = vector.broadcast %54 : vector<1x128xf32> to vector<8x128xf32>
    %56 = arith.mulf %53, %55 : vector<8x128xf32>
    %57 = arith.addf %41, %56 : vector<8x128xf32>
    %58 = arith.truncf %57 : vector<8x128xf32> to vector<8x128xbf16>
    %c0_16 = arith.constant 0 : index
    %c0_17 = arith.constant 0 : index
    %59 = vector.load %arg5[%c0_16, %c0_17] : memref<128x128xbf16, #tpu.memory_space<vmem>>, vector<128x128xbf16>
    %cst_18 = arith.constant dense<0.000000e+00> : vector<8x128xf32>
    %60 = tpu.matmul %58, %59, %cst_18 {dimension_numbers = #tpu.dot_dimension_numbers<[1], [0], [0], [1], [0, 0, 1, 1], [], []>} : vector<8x128xbf16>, vector<128x128xbf16>, vector<8x128xf32> -> vector<8x128xf32>
    %c0_19 = arith.constant 0 : index
    %c0_20 = arith.constant 0 : index
    %61 = vector.load %arg6[%c0_19, %c0_20] : memref<1x128xf32, #tpu.memory_space<vmem>>, vector<1x128xf32>
    %62 = vector.broadcast %61 : vector<1x128xf32> to vector<8x128xf32>
    %63 = arith.addf %60, %62 : vector<8x128xf32>
    %cst_21 = arith.constant 0.000000e+00 : f32
    %64 = vector.broadcast %cst_21 : f32 to vector<8x128xf32>
    %65 = arith.maximumf %63, %64 : vector<8x128xf32>
    %c0_22 = arith.constant 0 : index
    %c0_23 = arith.constant 0 : index
    %c0_24 = arith.constant 0 : index
    %66 = vector.load %arg7[%c0_22, %c0_23, %c0_24] : memref<1x8x128xf32, #tpu.memory_space<vmem>>, vector<1x8x128xf32>
    %67 = vector.shape_cast %66 : vector<1x8x128xf32> to vector<8x128xf32>
    %68 = vector.shape_cast %65 : vector<8x128xf32> to vector<1x8x128xf32>
    tpu.vector_store %arg7[%c0_22, %c0_23, %c0_24], %68 {strides = array<i32>} : memref<1x8x128xf32, #tpu.memory_space<vmem>>, vector<1x8x128xf32>,
    return
  }
  func.func @transform_0(%arg0: i32, %arg1: i32, %arg2: memref<2xi32, #tpu.memory_space<smem>>) -> (i32, i32, i32, i32) {
    %c0_i32 = arith.constant 0 : i32
    %c0_i32_0 = arith.constant 0 : i32
    %c0_i32_1 = arith.constant 0 : i32
    %c0_i32_2 = arith.constant 0 : i32
    return %arg0, %c0_i32, %c0_i32_0, %c0_i32_1 : i32, i32, i32, i32
  }
  func.func @transform_1(%arg0: i32, %arg1: i32, %arg2: memref<2xi32, #tpu.memory_space<smem>>) -> (i32, i32) {
    %c0_i32 = arith.constant 0 : i32
    %c0_i32_0 = arith.constant 0 : i32
    %c0_i32_1 = arith.constant 0 : i32
    return %c0_i32, %c0_i32_0 : i32, i32
  }
  func.func @transform_2(%arg0: i32, %arg1: i32, %arg2: memref<2xi32, #tpu.memory_space<smem>>) -> (i32, i32) {
    %c0_i32 = arith.constant 0 : i32
    %c0_i32_0 = arith.constant 0 : i32
    %c0_i32_1 = arith.constant 0 : i32
    return %c0_i32, %c0_i32_0 : i32, i32
  }
  func.func @transform_3(%arg0: i32, %arg1: i32, %arg2: memref<2xi32, #tpu.memory_space<smem>>) -> (i32, i32) {
    %c0_i32 = arith.constant 0 : i32
    %c0_i32_0 = arith.constant 0 : i32
    %c0_i32_1 = arith.constant 0 : i32
    return %c0_i32, %c0_i32_0 : i32, i32
  }
  func.func @transform_4(%arg0: i32, %arg1: i32, %arg2: memref<2xi32, #tpu.memory_space<smem>>) -> (i32, i32, i32) {
    %c0_i32 = arith.constant 0 : i32
    %c0_i32_0 = arith.constant 0 : i32
    return %arg0, %arg1, %c0_i32 : i32, i32, i32
  }
}

module attributes {stable_mosaic.version = 11 : i64} {
  func.func @body(%arg0: i32, %arg1: i32, %arg2: memref<2xi32, #tpu.memory_space<smem>>, %arg3: memref<1x1x16x128xf32, #tpu.memory_space<vmem>>, %arg4: memref<3x128xf32, #tpu.memory_space<vmem>>, %arg5: memref<128x128xbf16, #tpu.memory_space<vmem>>, %arg6: memref<1x128xf32, #tpu.memory_space<vmem>>, %arg7: memref<1x8x128xf32, #tpu.memory_space<vmem>>) attributes {dimension_semantics = [#tpu.dimension_semantics<parallel>, #tpu.dimension_semantics<parallel>], iteration_bounds = array<i64: 2, 1>, scalar_prefetch = 1 : i64, scratch_operands = 0 : i64, tpu.core_type = #tpu.core_type<tc>, window_params = [{transform_indices = @transform_0, window_bounds = array<i64: 1, 1, 16, 128>}, {pipeline_mode = #tpu.pipeline_mode<synchronous>, transform_indices = @transform_1, window_bounds = array<i64: 3, 128>}, {pipeline_mode = #tpu.pipeline_mode<synchronous>, transform_indices = @transform_2, window_bounds = array<i64: 128, 128>}, {pipeline_mode = #tpu.pipeline_mode<synchronous>, transform_indices = @transform_3, window_bounds = array<i64: 1, 128>}, {transform_indices = @transform_4, window_bounds = array<i64: 1, 8, 128>}]} {
    %c8_i32 = arith.constant 8 : i32
    %0 = arith.muli %arg1, %c8_i32 : i32
    %1 = tpu.assume_multiple %0, 8 : i32
    %2 = arith.index_cast %arg0 : i32 to index
    %3 = memref.load %arg2[%2] : memref<2xi32, #tpu.memory_space<smem>>
    %c2_i32 = arith.constant 2 : i32
    %4 = arith.addi %3, %c2_i32 : i32
    %5 = tpu.iota {dimensions = array<i32: 0>} : vector<8x1xi32>
    %6 = vector.broadcast %1 : i32 to vector<8x1xi32>
    %7 = arith.addi %6, %5 : vector<8x1xi32>
    %c1_i32 = arith.constant 1 : i32
    %8 = vector.broadcast %c1_i32 : i32 to vector<8x1xi32>
    %9 = arith.muli %7, %8 : vector<8x1xi32>
    %c0 = arith.constant 0 : index
    %c0_0 = arith.constant 0 : index
    %10 = vector.load %arg4[%c0, %c0_0] : memref<3x128xf32, #tpu.memory_space<vmem>>, vector<3x128xf32>
    %c0_i32 = arith.constant 0 : i32
    %11 = arith.addi %1, %c0_i32 : i32
    %c0_1 = arith.constant 0 : index
    %c0_2 = arith.constant 0 : index
    %12 = arith.index_cast %11 : i32 to index
    %c0_3 = arith.constant 0 : index
    %13 = vector.load %arg3[%c0_1, %c0_2, %12, %c0_3] : memref<1x1x16x128xf32, #tpu.memory_space<vmem>>, vector<1x1x8x128xf32>
    %14 = vector.shape_cast %13 : vector<1x1x8x128xf32> to vector<8x128xf32>
    %c0_i32_4 = arith.constant 0 : i32
    %15 = vector.broadcast %c0_i32_4 : i32 to vector<8x1xi32>
    %16 = arith.addi %9, %15 : vector<8x1xi32>
    %17 = vector.broadcast %4 : i32 to vector<8x1xi32>
    %18 = arith.cmpi slt, %16, %17 : vector<8x1xi32>
    %cst = arith.constant 0.000000e+00 : f32
    %19 = vector.shape_cast %18 : vector<8x1xi1> to vector<8x1xi1>
    %20 = vector.broadcast %19 : vector<8x1xi1> to vector<8x128xi1>
    %21 = vector.broadcast %cst : f32 to vector<8x128xf32>
    %22 = arith.select %20, %14, %21 : vector<8x128xi1>, vector<8x128xf32>
    %23 = vector.extract_strided_slice %10 {offsets = [0, 0], sizes = [1, 128], strides = [1, 1]} : vector<3x128xf32> to vector<1x128xf32>
    %24 = vector.broadcast %23 : vector<1x128xf32> to vector<8x128xf32>
    %25 = arith.mulf %22, %24 : vector<8x128xf32>
    %c2_i32_5 = arith.constant 2 : i32
    %26 = arith.addi %1, %c2_i32_5 : i32
    %c0_6 = arith.constant 0 : index
    %c0_7 = arith.constant 0 : index
    %27 = arith.index_cast %26 : i32 to index
    %c0_8 = arith.constant 0 : index
    %28 = vector.load %arg3[%c0_6, %c0_7, %27, %c0_8] : memref<1x1x16x128xf32, #tpu.memory_space<vmem>>, vector<1x1x8x128xf32>
    %29 = vector.shape_cast %28 : vector<1x1x8x128xf32> to vector<8x128xf32>
    %c2_i32_9 = arith.constant 2 : i32
    %30 = vector.broadcast %c2_i32_9 : i32 to vector<8x1xi32>
    %31 = arith.addi %9, %30 : vector<8x1xi32>
    %32 = vector.broadcast %4 : i32 to vector<8x1xi32>
    %33 = arith.cmpi slt, %31, %32 : vector<8x1xi32>
    %cst_10 = arith.constant 0.000000e+00 : f32
    %34 = vector.shape_cast %33 : vector<8x1xi1> to vector<8x1xi1>
    %35 = vector.broadcast %34 : vector<8x1xi1> to vector<8x128xi1>
    %36 = vector.broadcast %cst_10 : f32 to vector<8x128xf32>
    %37 = arith.select %35, %29, %36 : vector<8x128xi1>, vector<8x128xf32>
    %38 = vector.extract_strided_slice %10 {offsets = [1, 0], sizes = [1, 128], strides = [1, 1]} : vector<3x128xf32> to vector<1x128xf32>
    %39 = vector.broadcast %38 : vector<1x128xf32> to vector<8x128xf32>
    %40 = arith.mulf %37, %39 : vector<8x128xf32>
    %41 = arith.addf %25, %40 : vector<8x128xf32>
    %c4_i32 = arith.constant 4 : i32
    %42 = arith.addi %1, %c4_i32 : i32
    %c0_11 = arith.constant 0 : index
    %c0_12 = arith.constant 0 : index
    %43 = arith.index_cast %42 : i32 to index
    %c0_13 = arith.constant 0 : index
    %44 = vector.load %arg3[%c0_11, %c0_12, %43, %c0_13] : memref<1x1x16x128xf32, #tpu.memory_space<vmem>>, vector<1x1x8x128xf32>
    %45 = vector.shape_cast %44 : vector<1x1x8x128xf32> to vector<8x128xf32>
    %c4_i32_14 = arith.constant 4 : i32
    %46 = vector.broadcast %c4_i32_14 : i32 to vector<8x1xi32>
    %47 = arith.addi %9, %46 : vector<8x1xi32>
    %48 = vector.broadcast %4 : i32 to vector<8x1xi32>
    %49 = arith.cmpi slt, %47, %48 : vector<8x1xi32>
    %cst_15 = arith.constant 0.000000e+00 : f32
    %50 = vector.shape_cast %49 : vector<8x1xi1> to vector<8x1xi1>
    %51 = vector.broadcast %50 : vector<8x1xi1> to vector<8x128xi1>
    %52 = vector.broadcast %cst_15 : f32 to vector<8x128xf32>
    %53 = arith.select %51, %45, %52 : vector<8x128xi1>, vector<8x128xf32>
    %54 = vector.extract_strided_slice %10 {offsets = [2, 0], sizes = [1, 128], strides = [1, 1]} : vector<3x128xf32> to vector<1x128xf32>
    %55 = vector.broadcast %54 : vector<1x128xf32> to vector<8x128xf32>
    %56 = arith.mulf %53, %55 : vector<8x128xf32>
    %57 = arith.addf %41, %56 : vector<8x128xf32>
    %58 = arith.truncf %57 : vector<8x128xf32> to vector<8x128xbf16>
    %c0_16 = arith.constant 0 : index
    %c0_17 = arith.constant 0 : index
    %59 = vector.load %arg5[%c0_16, %c0_17] : memref<128x128xbf16, #tpu.memory_space<vmem>>, vector<128x128xbf16>
    %cst_18 = arith.constant dense<0.000000e+00> : vector<8x128xf32>
    %60 = tpu.matmul %58, %59, %cst_18 {dimension_numbers = #tpu.dot_dimension_numbers<[1], [0], [0], [1], [0, 0, 1, 1], [], []>} : vector<8x128xbf16>, vector<128x128xbf16>, vector<8x128xf32> -> vector<8x128xf32>
    %c0_19 = arith.constant 0 : index
    %c0_20 = arith.constant 0 : index
    %61 = vector.load %arg6[%c0_19, %c0_20] : memref<1x128xf32, #tpu.memory_space<vmem>>, vector<1x128xf32>
    %62 = vector.broadcast %61 : vector<1x128xf32> to vector<8x128xf32>
    %63 = arith.addf %60, %62 : vector<8x128xf32>
    %cst_21 = arith.constant 0.000000e+00 : f32
    %64 = vector.broadcast %cst_21 : f32 to vector<8x128xf32>
    %65 = arith.maximumf %63, %64 : vector<8x128xf32>
    %c0_22 = arith.constant 0 : index
    %c0_23 = arith.constant 0 : index
    %c0_24 = arith.constant 0 : index
    %66 = vector.load %arg7[%c0_22, %c0_23, %c0_24] : memref<1x8x128xf32, #tpu.memory_space<vmem>>, vector<1x8x128xf32>
    %67 = vector.shape_cast %66 : vector<1x8x128xf32> to vector<8x128xf32>
    %68 = vector.shape_cast %65 : vector<8x128xf32> to vector<1x8x128xf32>
    tpu.vector_store %arg7[%c0_22, %c0_23, %c0_24], %68 {strides = array<i32>} : memref<1x8x128xf32, #tpu.memory_space<vmem>>, vector<1x8x128xf32>,
    return
  }
  func.func @transform_0(%arg0: i32, %arg1: i32, %arg2: memref<2xi32, #tpu.memory_space<smem>>) -> (i32, i32, i32, i32) {
    %c0_i32 = arith.constant 0 : i32
    %c0_i32_0 = arith.constant 0 : i32
    %c0_i32_1 = arith.constant 0 : i32
    %c0_i32_2 = arith.constant 0 : i32
    return %arg0, %c0_i32, %c0_i32_0, %c0_i32_1 : i32, i32, i32, i32
  }
  func.func @transform_1(%arg0: i32, %arg1: i32, %arg2: memref<2xi32, #tpu.memory_space<smem>>) -> (i32, i32) {
    %c0_i32 = arith.constant 0 : i32
    %c0_i32_0 = arith.constant 0 : i32
    %c0_i32_1 = arith.constant 0 : i32
    return %c0_i32, %c0_i32_0 : i32, i32
  }
  func.func @transform_2(%arg0: i32, %arg1: i32, %arg2: memref<2xi32, #tpu.memory_space<smem>>) -> (i32, i32) {
    %c0_i32 = arith.constant 0 : i32
    %c0_i32_0 = arith.constant 0 : i32
    %c0_i32_1 = arith.constant 0 : i32
    return %c0_i32, %c0_i32_0 : i32, i32
  }
  func.func @transform_3(%arg0: i32, %arg1: i32, %arg2: memref<2xi32, #tpu.memory_space<smem>>) -> (i32, i32) {
    %c0_i32 = arith.constant 0 : i32
    %c0_i32_0 = arith.constant 0 : i32
    %c0_i32_1 = arith.constant 0 : i32
    return %c0_i32, %c0_i32_0 : i32, i32
  }
  func.func @transform_4(%arg0: i32, %arg1: i32, %arg2: memref<2xi32, #tpu.memory_space<smem>>) -> (i32, i32, i32) {
    %c0_i32 = arith.constant 0 : i32
    %c0_i32_0 = arith.constant 0 : i32
    return %arg0, %arg1, %c0_i32 : i32, i32, i32
  }
}

module attributes {stable_mosaic.version = 11 : i64} {
  func.func @body(%arg0: i32, %arg1: i32, %arg2: memref<2xi32, #tpu.memory_space<smem>>, %arg3: memref<1x1x16x128xf32, #tpu.memory_space<vmem>>, %arg4: memref<3x128xf32, #tpu.memory_space<vmem>>, %arg5: memref<128x128xbf16, #tpu.memory_space<vmem>>, %arg6: memref<1x128xf32, #tpu.memory_space<vmem>>, %arg7: memref<1x8x128xf32, #tpu.memory_space<vmem>>, %arg8: memref<128x128xbf16, #tpu.memory_space<vmem>>, %arg9: memref<1x128xf32, #tpu.memory_space<vmem>>, %arg10: memref<1x8x128xf32, #tpu.memory_space<vmem>>) attributes {dimension_semantics = [#tpu.dimension_semantics<parallel>, #tpu.dimension_semantics<parallel>], iteration_bounds = array<i64: 2, 1>, scalar_prefetch = 1 : i64, scratch_operands = 0 : i64, tpu.core_type = #tpu.core_type<tc>, window_params = [{transform_indices = @transform_0, window_bounds = array<i64: 1, 1, 16, 128>}, {pipeline_mode = #tpu.pipeline_mode<synchronous>, transform_indices = @transform_1, window_bounds = array<i64: 3, 128>}, {pipeline_mode = #tpu.pipeline_mode<synchronous>, transform_indices = @transform_2, window_bounds = array<i64: 128, 128>}, {pipeline_mode = #tpu.pipeline_mode<synchronous>, transform_indices = @transform_3, window_bounds = array<i64: 1, 128>}, {transform_indices = @transform_4, window_bounds = array<i64: 1, 8, 128>}, {pipeline_mode = #tpu.pipeline_mode<synchronous>, transform_indices = @transform_5, window_bounds = array<i64: 128, 128>}, {pipeline_mode = #tpu.pipeline_mode<synchronous>, transform_indices = @transform_6, window_bounds = array<i64: 1, 128>}, {transform_indices = @transform_7, window_bounds = array<i64: 1, 8, 128>}]} {
    %c8_i32 = arith.constant 8 : i32
    %0 = arith.muli %arg1, %c8_i32 : i32
    %1 = tpu.assume_multiple %0, 8 : i32
    %2 = arith.index_cast %arg0 : i32 to index
    %3 = memref.load %arg2[%2] : memref<2xi32, #tpu.memory_space<smem>>
    %c1_i32 = arith.constant 1 : i32
    %4 = arith.addi %3, %c1_i32 : i32
    %5 = tpu.iota {dimensions = array<i32: 0>} : vector<8x1xi32>
    %6 = vector.broadcast %1 : i32 to vector<8x1xi32>
    %7 = arith.addi %6, %5 : vector<8x1xi32>
    %c1_i32_0 = arith.constant 1 : i32
    %8 = vector.broadcast %c1_i32_0 : i32 to vector<8x1xi32>
    %9 = arith.muli %7, %8 : vector<8x1xi32>
    %c0 = arith.constant 0 : index
    %c0_1 = arith.constant 0 : index
    %10 = vector.load %arg4[%c0, %c0_1] : memref<3x128xf32, #tpu.memory_space<vmem>>, vector<3x128xf32>
    %c0_i32 = arith.constant 0 : i32
    %11 = arith.addi %1, %c0_i32 : i32
    %c0_2 = arith.constant 0 : index
    %c0_3 = arith.constant 0 : index
    %12 = arith.index_cast %11 : i32 to index
    %c0_4 = arith.constant 0 : index
    %13 = vector.load %arg3[%c0_2, %c0_3, %12, %c0_4] : memref<1x1x16x128xf32, #tpu.memory_space<vmem>>, vector<1x1x8x128xf32>
    %14 = vector.shape_cast %13 : vector<1x1x8x128xf32> to vector<8x128xf32>
    %c0_i32_5 = arith.constant 0 : i32
    %15 = vector.broadcast %c0_i32_5 : i32 to vector<8x1xi32>
    %16 = arith.addi %9, %15 : vector<8x1xi32>
    %17 = vector.broadcast %4 : i32 to vector<8x1xi32>
    %18 = arith.cmpi slt, %16, %17 : vector<8x1xi32>
    %cst = arith.constant 0.000000e+00 : f32
    %19 = vector.shape_cast %18 : vector<8x1xi1> to vector<8x1xi1>
    %20 = vector.broadcast %19 : vector<8x1xi1> to vector<8x128xi1>
    %21 = vector.broadcast %cst : f32 to vector<8x128xf32>
    %22 = arith.select %20, %14, %21 : vector<8x128xi1>, vector<8x128xf32>
    %23 = vector.extract_strided_slice %10 {offsets = [0, 0], sizes = [1, 128], strides = [1, 1]} : vector<3x128xf32> to vector<1x128xf32>
    %24 = vector.broadcast %23 : vector<1x128xf32> to vector<8x128xf32>
    %25 = arith.mulf %22, %24 : vector<8x128xf32>
    %c1_i32_6 = arith.constant 1 : i32
    %26 = arith.addi %1, %c1_i32_6 : i32
    %c0_7 = arith.constant 0 : index
    %c0_8 = arith.constant 0 : index
    %27 = arith.index_cast %26 : i32 to index
    %c0_9 = arith.constant 0 : index
    %28 = vector.load %arg3[%c0_7, %c0_8, %27, %c0_9] : memref<1x1x16x128xf32, #tpu.memory_space<vmem>>, vector<1x1x8x128xf32>
    %29 = vector.shape_cast %28 : vector<1x1x8x128xf32> to vector<8x128xf32>
    %c1_i32_10 = arith.constant 1 : i32
    %30 = vector.broadcast %c1_i32_10 : i32 to vector<8x1xi32>
    %31 = arith.addi %9, %30 : vector<8x1xi32>
    %32 = vector.broadcast %4 : i32 to vector<8x1xi32>
    %33 = arith.cmpi slt, %31, %32 : vector<8x1xi32>
    %cst_11 = arith.constant 0.000000e+00 : f32
    %34 = vector.shape_cast %33 : vector<8x1xi1> to vector<8x1xi1>
    %35 = vector.broadcast %34 : vector<8x1xi1> to vector<8x128xi1>
    %36 = vector.broadcast %cst_11 : f32 to vector<8x128xf32>
    %37 = arith.select %35, %29, %36 : vector<8x128xi1>, vector<8x128xf32>
    %38 = vector.extract_strided_slice %10 {offsets = [1, 0], sizes = [1, 128], strides = [1, 1]} : vector<3x128xf32> to vector<1x128xf32>
    %39 = vector.broadcast %38 : vector<1x128xf32> to vector<8x128xf32>
    %40 = arith.mulf %37, %39 : vector<8x128xf32>
    %41 = arith.addf %25, %40 : vector<8x128xf32>
    %c2_i32 = arith.constant 2 : i32
    %42 = arith.addi %1, %c2_i32 : i32
    %c0_12 = arith.constant 0 : index
    %c0_13 = arith.constant 0 : index
    %43 = arith.index_cast %42 : i32 to index
    %c0_14 = arith.constant 0 : index
    %44 = vector.load %arg3[%c0_12, %c0_13, %43, %c0_14] : memref<1x1x16x128xf32, #tpu.memory_space<vmem>>, vector<1x1x8x128xf32>
    %45 = vector.shape_cast %44 : vector<1x1x8x128xf32> to vector<8x128xf32>
    %c2_i32_15 = arith.constant 2 : i32
    %46 = vector.broadcast %c2_i32_15 : i32 to vector<8x1xi32>
    %47 = arith.addi %9, %46 : vector<8x1xi32>
    %48 = vector.broadcast %4 : i32 to vector<8x1xi32>
    %49 = arith.cmpi slt, %47, %48 : vector<8x1xi32>
    %cst_16 = arith.constant 0.000000e+00 : f32
    %50 = vector.shape_cast %49 : vector<8x1xi1> to vector<8x1xi1>
    %51 = vector.broadcast %50 : vector<8x1xi1> to vector<8x128xi1>
    %52 = vector.broadcast %cst_16 : f32 to vector<8x128xf32>
    %53 = arith.select %51, %45, %52 : vector<8x128xi1>, vector<8x128xf32>
    %54 = vector.extract_strided_slice %10 {offsets = [2, 0], sizes = [1, 128], strides = [1, 1]} : vector<3x128xf32> to vector<1x128xf32>
    %55 = vector.broadcast %54 : vector<1x128xf32> to vector<8x128xf32>
    %56 = arith.mulf %53, %55 : vector<8x128xf32>
    %57 = arith.addf %41, %56 : vector<8x128xf32>
    %58 = arith.truncf %57 : vector<8x128xf32> to vector<8x128xbf16>
    %c0_17 = arith.constant 0 : index
    %c0_18 = arith.constant 0 : index
    %59 = vector.load %arg5[%c0_17, %c0_18] : memref<128x128xbf16, #tpu.memory_space<vmem>>, vector<128x128xbf16>
    %cst_19 = arith.constant dense<0.000000e+00> : vector<8x128xf32>
    %60 = tpu.matmul %58, %59, %cst_19 {dimension_numbers = #tpu.dot_dimension_numbers<[1], [0], [0], [1], [0, 0, 1, 1], [], []>} : vector<8x128xbf16>, vector<128x128xbf16>, vector<8x128xf32> -> vector<8x128xf32>
    %c0_20 = arith.constant 0 : index
    %c0_21 = arith.constant 0 : index
    %61 = vector.load %arg6[%c0_20, %c0_21] : memref<1x128xf32, #tpu.memory_space<vmem>>, vector<1x128xf32>
    %62 = vector.broadcast %61 : vector<1x128xf32> to vector<8x128xf32>
    %63 = arith.addf %60, %62 : vector<8x128xf32>
    %c0_22 = arith.constant 0 : index
    %64 = arith.index_cast %1 : i32 to index
    %c0_23 = arith.constant 0 : index
    %65 = vector.load %arg7[%c0_22, %64, %c0_23] : memref<1x8x128xf32, #tpu.memory_space<vmem>>, vector<1x8x128xf32>
    %66 = vector.shape_cast %65 : vector<1x8x128xf32> to vector<8x128xf32>
    %67 = vector.broadcast %1 : i32 to vector<8x1xi32>
    %68 = arith.addi %67, %5 : vector<8x1xi32>
    %69 = vector.broadcast %3 : i32 to vector<8x1xi32>
    %70 = arith.cmpi slt, %68, %69 : vector<8x1xi32>
    %cst_24 = arith.constant 0.000000e+00 : f32
    %71 = vector.shape_cast %70 : vector<8x1xi1> to vector<8x1xi1>
    %72 = vector.broadcast %71 : vector<8x1xi1> to vector<8x128xi1>
    %73 = vector.broadcast %cst_24 : f32 to vector<8x128xf32>
    %74 = arith.select %72, %66, %73 : vector<8x128xi1>, vector<8x128xf32>
    %75 = arith.truncf %74 : vector<8x128xf32> to vector<8x128xbf16>
    %c0_25 = arith.constant 0 : index
    %c0_26 = arith.constant 0 : index
    %76 = vector.load %arg8[%c0_25, %c0_26] : memref<128x128xbf16, #tpu.memory_space<vmem>>, vector<128x128xbf16>
    %cst_27 = arith.constant dense<0.000000e+00> : vector<8x128xf32>
    %77 = tpu.matmul %75, %76, %cst_27 {dimension_numbers = #tpu.dot_dimension_numbers<[1], [0], [0], [1], [0, 0, 1, 1], [], []>} : vector<8x128xbf16>, vector<128x128xbf16>, vector<8x128xf32> -> vector<8x128xf32>
    %78 = arith.addf %63, %77 : vector<8x128xf32>
    %c0_28 = arith.constant 0 : index
    %c0_29 = arith.constant 0 : index
    %79 = vector.load %arg9[%c0_28, %c0_29] : memref<1x128xf32, #tpu.memory_space<vmem>>, vector<1x128xf32>
    %80 = vector.broadcast %79 : vector<1x128xf32> to vector<8x128xf32>
    %81 = arith.addf %78, %80 : vector<8x128xf32>
    %cst_30 = arith.constant 0.000000e+00 : f32
    %82 = vector.broadcast %cst_30 : f32 to vector<8x128xf32>
    %83 = arith.maximumf %81, %82 : vector<8x128xf32>
    %c0_31 = arith.constant 0 : index
    %c0_32 = arith.constant 0 : index
    %c0_33 = arith.constant 0 : index
    %84 = vector.load %arg10[%c0_31, %c0_32, %c0_33] : memref<1x8x128xf32, #tpu.memory_space<vmem>>, vector<1x8x128xf32>
    %85 = vector.shape_cast %84 : vector<1x8x128xf32> to vector<8x128xf32>
    %86 = vector.shape_cast %83 : vector<8x128xf32> to vector<1x8x128xf32>
    tpu.vector_store %arg10[%c0_31, %c0_32, %c0_33], %86 {strides = array<i32>} : memref<1x8x128xf32, #tpu.memory_space<vmem>>, vector<1x8x128xf32>,
    return
  }
  func.func @transform_0(%arg0: i32, %arg1: i32, %arg2: memref<2xi32, #tpu.memory_space<smem>>) -> (i32, i32, i32, i32) {
    %c0_i32 = arith.constant 0 : i32
    %c0_i32_0 = arith.constant 0 : i32
    %c0_i32_1 = arith.constant 0 : i32
    %c0_i32_2 = arith.constant 0 : i32
    return %arg0, %c0_i32, %c0_i32_0, %c0_i32_1 : i32, i32, i32, i32
  }
  func.func @transform_1(%arg0: i32, %arg1: i32, %arg2: memref<2xi32, #tpu.memory_space<smem>>) -> (i32, i32) {
    %c0_i32 = arith.constant 0 : i32
    %c0_i32_0 = arith.constant 0 : i32
    %c0_i32_1 = arith.constant 0 : i32
    return %c0_i32, %c0_i32_0 : i32, i32
  }
  func.func @transform_2(%arg0: i32, %arg1: i32, %arg2: memref<2xi32, #tpu.memory_space<smem>>) -> (i32, i32) {
    %c0_i32 = arith.constant 0 : i32
    %c0_i32_0 = arith.constant 0 : i32
    %c0_i32_1 = arith.constant 0 : i32
    return %c0_i32, %c0_i32_0 : i32, i32
  }
  func.func @transform_3(%arg0: i32, %arg1: i32, %arg2: memref<2xi32, #tpu.memory_space<smem>>) -> (i32, i32) {
    %c0_i32 = arith.constant 0 : i32
    %c0_i32_0 = arith.constant 0 : i32
    %c0_i32_1 = arith.constant 0 : i32
    return %c0_i32, %c0_i32_0 : i32, i32
  }
  func.func @transform_4(%arg0: i32, %arg1: i32, %arg2: memref<2xi32, #tpu.memory_space<smem>>) -> (i32, i32, i32) {
    %c0_i32 = arith.constant 0 : i32
    %c0_i32_0 = arith.constant 0 : i32
    %c0_i32_1 = arith.constant 0 : i32
    return %arg0, %c0_i32, %c0_i32_0 : i32, i32, i32
  }
  func.func @transform_5(%arg0: i32, %arg1: i32, %arg2: memref<2xi32, #tpu.memory_space<smem>>) -> (i32, i32) {
    %c0_i32 = arith.constant 0 : i32
    %c0_i32_0 = arith.constant 0 : i32
    %c0_i32_1 = arith.constant 0 : i32
    return %c0_i32, %c0_i32_0 : i32, i32
  }
  func.func @transform_6(%arg0: i32, %arg1: i32, %arg2: memref<2xi32, #tpu.memory_space<smem>>) -> (i32, i32) {
    %c0_i32 = arith.constant 0 : i32
    %c0_i32_0 = arith.constant 0 : i32
    %c0_i32_1 = arith.constant 0 : i32
    return %c0_i32, %c0_i32_0 : i32, i32
  }
  func.func @transform_7(%arg0: i32, %arg1: i32, %arg2: memref<2xi32, #tpu.memory_space<smem>>) -> (i32, i32, i32) {
    %c0_i32 = arith.constant 0 : i32
    %c0_i32_0 = arith.constant 0 : i32
    return %arg0, %arg1, %c0_i32 : i32, i32, i32
  }
}

module attributes {stable_mosaic.version = 11 : i64} {
  func.func @body(%arg0: i32, %arg1: i32, %arg2: memref<2xi32, #tpu.memory_space<smem>>, %arg3: memref<1x1x8x128xf32, #tpu.memory_space<vmem>>, %arg4: memref<128x128xbf16, #tpu.memory_space<vmem>>, %arg5: memref<1x128xf32, #tpu.memory_space<vmem>>, %arg6: memref<1x8x128xf32, #tpu.memory_space<vmem>>) attributes {dimension_semantics = [#tpu.dimension_semantics<parallel>, #tpu.dimension_semantics<parallel>], iteration_bounds = array<i64: 2, 1>, scalar_prefetch = 1 : i64, scratch_operands = 0 : i64, tpu.core_type = #tpu.core_type<tc>, window_params = [{transform_indices = @transform_0, window_bounds = array<i64: 1, 1, 8, 128>}, {pipeline_mode = #tpu.pipeline_mode<synchronous>, transform_indices = @transform_1, window_bounds = array<i64: 128, 128>}, {pipeline_mode = #tpu.pipeline_mode<synchronous>, transform_indices = @transform_2, window_bounds = array<i64: 1, 128>}, {transform_indices = @transform_3, window_bounds = array<i64: 1, 8, 128>}]} {
    %c8_i32 = arith.constant 8 : i32
    %0 = arith.muli %arg1, %c8_i32 : i32
    %1 = tpu.assume_multiple %0, 8 : i32
    %2 = arith.index_cast %arg0 : i32 to index
    %3 = memref.load %arg2[%2] : memref<2xi32, #tpu.memory_space<smem>>
    %c0_i32 = arith.constant 0 : i32
    %4 = arith.addi %3, %c0_i32 : i32
    %5 = tpu.iota {dimensions = array<i32: 0>} : vector<8x1xi32>
    %6 = vector.broadcast %1 : i32 to vector<8x1xi32>
    %7 = arith.addi %6, %5 : vector<8x1xi32>
    %c1_i32 = arith.constant 1 : i32
    %8 = vector.broadcast %c1_i32 : i32 to vector<8x1xi32>
    %9 = arith.muli %7, %8 : vector<8x1xi32>
    %c0_i32_0 = arith.constant 0 : i32
    %10 = arith.addi %1, %c0_i32_0 : i32
    %c0 = arith.constant 0 : index
    %c0_1 = arith.constant 0 : index
    %11 = arith.index_cast %10 : i32 to index
    %c0_2 = arith.constant 0 : index
    %12 = vector.load %arg3[%c0, %c0_1, %11, %c0_2] : memref<1x1x8x128xf32, #tpu.memory_space<vmem>>, vector<1x1x8x128xf32>
    %13 = vector.shape_cast %12 : vector<1x1x8x128xf32> to vector<8x128xf32>
    %c0_i32_3 = arith.constant 0 : i32
    %14 = vector.broadcast %c0_i32_3 : i32 to vector<8x1xi32>
    %15 = arith.addi %9, %14 : vector<8x1xi32>
    %16 = vector.broadcast %4 : i32 to vector<8x1xi32>
    %17 = arith.cmpi slt, %15, %16 : vector<8x1xi32>
    %cst = arith.constant 0.000000e+00 : f32
    %18 = vector.shape_cast %17 : vector<8x1xi1> to vector<8x1xi1>
    %19 = vector.broadcast %18 : vector<8x1xi1> to vector<8x128xi1>
    %20 = vector.broadcast %cst : f32 to vector<8x128xf32>
    %21 = arith.select %19, %13, %20 : vector<8x128xi1>, vector<8x128xf32>
    %22 = arith.truncf %21 : vector<8x128xf32> to vector<8x128xbf16>
    %c0_4 = arith.constant 0 : index
    %c0_5 = arith.constant 0 : index
    %23 = vector.load %arg4[%c0_4, %c0_5] : memref<128x128xbf16, #tpu.memory_space<vmem>>, vector<128x128xbf16>
    %cst_6 = arith.constant dense<0.000000e+00> : vector<8x128xf32>
    %24 = tpu.matmul %22, %23, %cst_6 {dimension_numbers = #tpu.dot_dimension_numbers<[1], [0], [0], [1], [0, 0, 1, 1], [], []>} : vector<8x128xbf16>, vector<128x128xbf16>, vector<8x128xf32> -> vector<8x128xf32>
    %c0_7 = arith.constant 0 : index
    %c0_8 = arith.constant 0 : index
    %25 = vector.load %arg5[%c0_7, %c0_8] : memref<1x128xf32, #tpu.memory_space<vmem>>, vector<1x128xf32>
    %26 = vector.broadcast %25 : vector<1x128xf32> to vector<8x128xf32>
    %27 = arith.addf %24, %26 : vector<8x128xf32>
    %cst_9 = arith.constant dense<0xFF800000> : vector<8xf32>
    %28 = vector.multi_reduction <maximumf>, %27, %cst_9 [1] : vector<8x128xf32> to vector<8xf32>
    %29 = vector.shape_cast %28 : vector<8xf32> to vector<8x1xf32>
    %30 = vector.broadcast %29 : vector<8x1xf32> to vector<8x128xf32>
    %31 = arith.subf %27, %30 : vector<8x128xf32>
    %32 = math.exp %31 : vector<8x128xf32>
    %cst_10 = arith.constant dense<0.000000e+00> : vector<8xf32>
    %33 = vector.multi_reduction <add>, %32, %cst_10 [1] : vector<8x128xf32> to vector<8xf32>
    %34 = vector.shape_cast %33 : vector<8xf32> to vector<8x1xf32>
    %35 = math.log %34 : vector<8x1xf32>
    %36 = vector.broadcast %35 : vector<8x1xf32> to vector<8x128xf32>
    %37 = arith.subf %31, %36 : vector<8x128xf32>
    %c0_11 = arith.constant 0 : index
    %c0_12 = arith.constant 0 : index
    %c0_13 = arith.constant 0 : index
    %38 = vector.load %arg6[%c0_11, %c0_12, %c0_13] : memref<1x8x128xf32, #tpu.memory_space<vmem>>, vector<1x8x128xf32>
    %39 = vector.shape_cast %38 : vector<1x8x128xf32> to vector<8x128xf32>
    %40 = vector.shape_cast %37 : vector<8x128xf32> to vector<1x8x128xf32>
    tpu.vector_store %arg6[%c0_11, %c0_12, %c0_13], %40 {strides = array<i32>} : memref<1x8x128xf32, #tpu.memory_space<vmem>>, vector<1x8x128xf32>,
    return
  }
  func.func @transform_0(%arg0: i32, %arg1: i32, %arg2: memref<2xi32, #tpu.memory_space<smem>>) -> (i32, i32, i32, i32) {
    %c0_i32 = arith.constant 0 : i32
    %c0_i32_0 = arith.constant 0 : i32
    %c0_i32_1 = arith.constant 0 : i32
    %c0_i32_2 = arith.constant 0 : i32
    return %arg0, %c0_i32, %c0_i32_0, %c0_i32_1 : i32, i32, i32, i32
  }
  func.func @transform_1(%arg0: i32, %arg1: i32, %arg2: memref<2xi32, #tpu.memory_space<smem>>) -> (i32, i32) {
    %c0_i32 = arith.constant 0 : i32
    %c0_i32_0 = arith.constant 0 : i32
    %c0_i32_1 = arith.constant 0 : i32
    return %c0_i32, %c0_i32_0 : i32, i32
  }
  func.func @transform_2(%arg0: i32, %arg1: i32, %arg2: memref<2xi32, #tpu.memory_space<smem>>) -> (i32, i32) {
    %c0_i32 = arith.constant 0 : i32
    %c0_i32_0 = arith.constant 0 : i32
    %c0_i32_1 = arith.constant 0 : i32
    return %c0_i32, %c0_i32_0 : i32, i32
  }
  func.func @transform_3(%arg0: i32, %arg1: i32, %arg2: memref<2xi32, #tpu.memory_space<smem>>) -> (i32, i32, i32) {
    %c0_i32 = arith.constant 0 : i32
    %c0_i32_0 = arith.constant 0 : i32
    return %arg0, %arg1, %c0_i32 : i32, i32, i32
  }
}

module attributes {stable_mosaic.version = 11 : i64} {
  func.func @body(%arg0: i32, %arg1: i32, %arg2: memref<2xi32, #tpu.memory_space<smem>>, %arg3: memref<1x1x8x128xf32, #tpu.memory_space<vmem>>, %arg4: memref<128x128xbf16, #tpu.memory_space<vmem>>, %arg5: memref<1x128xf32, #tpu.memory_space<vmem>>, %arg6: memref<1x8x128xf32, #tpu.memory_space<vmem>>) attributes {dimension_semantics = [#tpu.dimension_semantics<parallel>, #tpu.dimension_semantics<parallel>], iteration_bounds = array<i64: 2, 1>, scalar_prefetch = 1 : i64, scratch_operands = 0 : i64, tpu.core_type = #tpu.core_type<tc>, window_params = [{transform_indices = @transform_0, window_bounds = array<i64: 1, 1, 8, 128>}, {pipeline_mode = #tpu.pipeline_mode<synchronous>, transform_indices = @transform_1, window_bounds = array<i64: 128, 128>}, {pipeline_mode = #tpu.pipeline_mode<synchronous>, transform_indices = @transform_2, window_bounds = array<i64: 1, 128>}, {transform_indices = @transform_3, window_bounds = array<i64: 1, 8, 128>}]} {
    %c8_i32 = arith.constant 8 : i32
    %0 = arith.muli %arg1, %c8_i32 : i32
    %1 = tpu.assume_multiple %0, 8 : i32
    %2 = arith.index_cast %arg0 : i32 to index
    %3 = memref.load %arg2[%2] : memref<2xi32, #tpu.memory_space<smem>>
    %c0_i32 = arith.constant 0 : i32
    %4 = arith.addi %3, %c0_i32 : i32
    %5 = tpu.iota {dimensions = array<i32: 0>} : vector<8x1xi32>
    %6 = vector.broadcast %1 : i32 to vector<8x1xi32>
    %7 = arith.addi %6, %5 : vector<8x1xi32>
    %c1_i32 = arith.constant 1 : i32
    %8 = vector.broadcast %c1_i32 : i32 to vector<8x1xi32>
    %9 = arith.muli %7, %8 : vector<8x1xi32>
    %c0_i32_0 = arith.constant 0 : i32
    %10 = arith.addi %1, %c0_i32_0 : i32
    %c0 = arith.constant 0 : index
    %c0_1 = arith.constant 0 : index
    %11 = arith.index_cast %10 : i32 to index
    %c0_2 = arith.constant 0 : index
    %12 = vector.load %arg3[%c0, %c0_1, %11, %c0_2] : memref<1x1x8x128xf32, #tpu.memory_space<vmem>>, vector<1x1x8x128xf32>
    %13 = vector.shape_cast %12 : vector<1x1x8x128xf32> to vector<8x128xf32>
    %c0_i32_3 = arith.constant 0 : i32
    %14 = vector.broadcast %c0_i32_3 : i32 to vector<8x1xi32>
    %15 = arith.addi %9, %14 : vector<8x1xi32>
    %16 = vector.broadcast %4 : i32 to vector<8x1xi32>
    %17 = arith.cmpi slt, %15, %16 : vector<8x1xi32>
    %cst = arith.constant 0.000000e+00 : f32
    %18 = vector.shape_cast %17 : vector<8x1xi1> to vector<8x1xi1>
    %19 = vector.broadcast %18 : vector<8x1xi1> to vector<8x128xi1>
    %20 = vector.broadcast %cst : f32 to vector<8x128xf32>
    %21 = arith.select %19, %13, %20 : vector<8x128xi1>, vector<8x128xf32>
    %22 = arith.truncf %21 : vector<8x128xf32> to vector<8x128xbf16>
    %c0_4 = arith.constant 0 : index
    %c0_5 = arith.constant 0 : index
    %23 = vector.load %arg4[%c0_4, %c0_5] : memref<128x128xbf16, #tpu.memory_space<vmem>>, vector<128x128xbf16>
    %cst_6 = arith.constant dense<0.000000e+00> : vector<8x128xf32>
    %24 = tpu.matmul %22, %23, %cst_6 {dimension_numbers = #tpu.dot_dimension_numbers<[1], [0], [0], [1], [0, 0, 1, 1], [], []>} : vector<8x128xbf16>, vector<128x128xbf16>, vector<8x128xf32> -> vector<8x128xf32>
    %c0_7 = arith.constant 0 : index
    %c0_8 = arith.constant 0 : index
    %25 = vector.load %arg5[%c0_7, %c0_8] : memref<1x128xf32, #tpu.memory_space<vmem>>, vector<1x128xf32>
    %26 = vector.broadcast %25 : vector<1x128xf32> to vector<8x128xf32>
    %27 = arith.addf %24, %26 : vector<8x128xf32>
    %cst_9 = arith.constant 0.000000e+00 : f32
    %28 = vector.broadcast %cst_9 : f32 to vector<8x128xf32>
    %29 = arith.maximumf %27, %28 : vector<8x128xf32>
    %c0_10 = arith.constant 0 : index
    %c0_11 = arith.constant 0 : index
    %c0_12 = arith.constant 0 : index
    %30 = vector.load %arg6[%c0_10, %c0_11, %c0_12] : memref<1x8x128xf32, #tpu.memory_space<vmem>>, vector<1x8x128xf32>
    %31 = vector.shape_cast %30 : vector<1x8x128xf32> to vector<8x128xf32>
    %32 = vector.shape_cast %29 : vector<8x128xf32> to vector<1x8x128xf32>
    tpu.vector_store %arg6[%c0_10, %c0_11, %c0_12], %32 {strides = array<i32>} : memref<1x8x128xf32, #tpu.memory_space<vmem>>, vector<1x8x128xf32>,
    return
  }
  func.func @transform_0(%arg0: i32, %arg1: i32, %arg2: memref<2xi32, #tpu.memory_space<smem>>) -> (i32, i32, i32, i32) {
    %c0_i32 = arith.constant 0 : i32
    %c0_i32_0 = arith.constant 0 : i32
    %c0_i32_1 = arith.constant 0 : i32
    %c0_i32_2 = arith.constant 0 : i32
    return %arg0, %c0_i32, %c0_i32_0, %c0_i32_1 : i32, i32, i32, i32
  }
  func.func @transform_1(%arg0: i32, %arg1: i32, %arg2: memref<2xi32, #tpu.memory_space<smem>>) -> (i32, i32) {
    %c0_i32 = arith.constant 0 : i32
    %c0_i32_0 = arith.constant 0 : i32
    %c0_i32_1 = arith.constant 0 : i32
    return %c0_i32, %c0_i32_0 : i32, i32
  }
  func.func @transform_2(%arg0: i32, %arg1: i32, %arg2: memref<2xi32, #tpu.memory_space<smem>>) -> (i32, i32) {
    %c0_i32 = arith.constant 0 : i32
    %c0_i32_0 = arith.constant 0 : i32
    %c0_i32_1 = arith.constant 0 : i32
    return %c0_i32, %c0_i32_0 : i32, i32
  }
  func.func @transform_3(%arg0: i32, %arg1: i32, %arg2: memref<2xi32, #tpu.memory_space<smem>>) -> (i32, i32, i32) {
    %c0_i32 = arith.constant 0 : i32
    %c0_i32_0 = arith.constant 0 : i32
    return %arg0, %arg1, %c0_i32 : i32, i32, i32
  }
}

</mosaic_0001>

<bundles_post_ra>
// kernel: quartznet_forward.8
= control target key start
LH: loop header
LB: loop body
LE: loop exit
PB: predicated region body
PF: predicated region fallthrough
CT: control target
= control target key end

     0   :  { %s693_s0 = inlined_call_operand.vmem [shape: s32[2], index: 0, kind: input, shape index: {}]   ;;  %s694_s1 = inlined_call_operand.vmem [shape: f32[2,2,16,128], index: 1, kind: input, shape index: {}]   ;;  %s695_s2 = inlined_call_operand.vmem [shape: f32[3,128], index: 2, kind: input, shape index: {}]   ;;  %s696_s3 = inlined_call_operand.vmem [shape: bf16[128,128], index: 3, kind: input, shape index: {}]   ;;  %s697_s4 = inlined_call_operand.vmem [shape: f32[1,128], index: 4, kind: input, shape index: {}]   ;;  %s698_s5 = inlined_call_operand.vmem [shape: f32[2,8,128], index: 5, kind: output, shape index: {}]  }
   0x1   :  { %s10_s20 = sshll.u32 %s693_s0, 4  ;;  %s11_s20 = int_to_ptr.vmem [resolvable:$true] %s10_s20 }
   0x2   :  { %s552_s21 = scalar_lea.vmem %s11_s20, 16  ;;  %p557_p1 = scmp.lt.s32.totalorder %s11_s20, %s11_s20 }
   0x3   :  { %p553_p0 = scmp.ne.s32.totalorder %s11_s20, %s552_s21  ;;  %p558_p2 = scmp.lt.s32.totalorder %s552_s21, %s552_s21 }
   0x5   :  { %p559_p3 = por %p558_p2, %p557_p1 }
   0x7   :  { %p560_p4 = pnand %p559_p3, %p553_p0 }
   0x9   :  { %563 = shalt.err (!%p560_p4)  }
   0xa   :  { %s590_s22 = smov [#allocation3]  }
   0xb   :  { %13 = dma.vmem_to_smem %s11_s20, 16, %s590_s22, [#allocation2] }
   0xc   :  { %576 = dma.done.wait [#allocation2], 16 }
   0xd   :  { %577 = vsyncadd [#allocation2], 4294967280 }
   0xe   :  { %15 = sfence }
   0xf   :  { %s626_s23 = smov 0   ;;  %s628_s24 = smov 0  }
  0x10   :  { %s630_s25 = smov 0  }
  0x11 LB: > { %s33_s0 = sadd.s32 1, %s584_s24  ;;  %p470_p5 = scmp.ge.s32.totalorder %s588_s25, 1  ;;  %s588_s25 = sphi %s630_s25, %s21_s25   ;;  %s584_s24 = sphi %s628_s24, %s700_s24   ;;  %s580_s23 = sphi %s626_s23, %s699_s23  }
  0x12   : > { %p35_p6 = scmp.ge.s32.totalorder %s33_s0, 2  ;;  %p183_p7 = scmp.lt.s32.totalorder %s588_s25, 3 }
  0x14   : > { %s702_s0 = smov (%p35_p6, %s33_s0), 0  ;;  %p184_p8 = pnand %p470_p5, %p183_p7 }
  0x15   : > { %v544_v0 = vld [vmem:[%s696_s3] sm:$0xff] (!%p184_p8)   ;;  %v591_v1 = vmov (!%p184_p8), 0.0   ;;  %v227_v2 = vlaneseq (!%p184_p8)  ;;  %v545_v3 = vld [vmem:[%s696_s3 + $0x8] sm:$0xff] (!%p184_p8)   ;;  %vm592_vm0 = vmmov (!%p184_p8), 0   ;;  %p211_p9 = scmp.lt.s32.totalorder (!%p184_p8), %s580_s23, 1  ;;  %s225_s30 = sld [smem:[#allocation3 + %s580_s23]] (!%p184_p8) }
  0x16   : > { %187 = sbr.rel (%p184_p8) target bundleno = 271 (0x10f), region = 36  ;;  %497 = vmatprep.subr.bf16.mxu0 (!%p184_p8), %v591_v1  ;;  %513 = vmatprep.mubr.msk.bf16.mxu0 (!%p184_p8), %vm592_vm0, %v591_v1  ;;  %v546_v5 = vld [vmem:[%s696_s3 + $0x10] sm:$0xff] (!%p184_p8)   ;;  %v547_v10 = vld [vmem:[%s696_s3 + $0x18] sm:$0xff] (!%p184_p8)   ;;  %v232_v11 = vld [vmem:[%s695_s2] sm:$0x7] (!%p184_p8) }
  0x17   : > { %498 = vmatpush3.bf16.msra.mxu0 (!%p184_p8), %v544_v0  ;;  %v228_v4 = vshrl.u32 (!%p184_p8), %v227_v2, 7  ;;  %v548_v19 = vld [vmem:[%s696_s3 + $0x20] sm:$0xff] (!%p184_p8)   ;;  %v549_v26 = vld [vmem:[%s696_s3 + $0x28] sm:$0xff] (!%p184_p8)   ;;  %v550_v30 = vld [vmem:[%s696_s3 + $0x30] sm:$0xff] (!%p184_p8)  }
  0x18   : > { %499 = vmatprep.subr.bf16.mxu0 (!%p184_p8), %v591_v1  ;;  %v551_v32 = vld [vmem:[%s696_s3 + $0x38] sm:$0xff] (!%p184_p8)   ;;  %v476_v34 = vld [vmem:[%s697_s4] ss:$0 sm:$0xff] (!%p184_p8) }
  0x19   : > { %v231_v6 = vmul.u32 (!%p184_p8), 2, %v228_v4  ;;  %v242_v7 = vsub.s32 (!%p184_p8), 0, %v228_v4  ;;  %v255_v9 = vsub.s32 (!%p184_p8), 1, %v228_v4  ;;  %v269_v18 = vsub.s32 (!%p184_p8), 2, %v228_v4 }
  0x1b   : > { %500 = vmatpush3.bf16.msra.mxu0 (!%p184_p8), %v545_v3  ;;  %s226_s12 = sadd.s32 (!%p184_p8), 1, %s225_s30  ;;  %v248_v8 = vadd.s32 (!%p184_p8), 1, %v231_v6  ;;  %v262_v15 = vadd.s32 (!%p184_p8), 2, %v231_v6  ;;  %v243_v16 = vrot.slane (!%p184_p8), %v232_v11, %v242_v7  ;;  %v256_v17 = vrot.slane (!%p184_p8), %v232_v11, %v255_v9 }
  0x1c   : > { %501 = vmatprep.subr.bf16.mxu0 (!%p184_p8), %v591_v1  ;;  %v235_v12 = vstv (!%p184_p8), %s226_s12  ;;  %v270_v25 = vrot.slane (!%p184_p8), %v232_v11, %v269_v18 }
  0x1d   : > { %s704_s23 = smov (!%p211_p9, %s580_s23), 1  ;;  %vm236_vm1 = vcmp.lt.s32.totalorder %v231_v6, %v235_v12  ;;  %vm249_vm2 = vcmp.lt.s32.totalorder %v248_v8, %v235_v12  ;;  %vm263_vm3 = vcmp.lt.s32.totalorder %v262_v15, %v235_v12 }
  0x1e   : > { %s487_s8 = sshll.u32 %s704_s23, 5  ;;  %s473_s30 = sshll.u32 %s704_s23, 3 }
  0x1f   : > { %s215_s11 = scalar_lea.vmem %s694_s1, %s487_s8  ;;  %502 = vmatpush3.bf16.msra.mxu0 %v546_v5  ;;  %s222_s8 = scalar_lea.vmem %s698_s5, %s473_s30 }
  0x20   : > { %503 = vmatprep.subr.bf16.mxu0 %v591_v1  ;;  %v234_v13 = vld [vmem:[%s215_s11] sm:$0xff]  ;;  %v474_v14 = vld [vmem:[%s215_s11 + $0x10] sm:$0xff] }
  0x21   : > { %v239_v20 = vsel %vm236_vm1, %v234_v13, 0.0  ;;  %v252_v21 = vsel %vm249_vm2, %v474_v14, 0.0  ;;  %v475_v22 = vld [vmem:[%s215_s11 + $0x1] sm:$0xff] }
  0x22   : > { %v244_v23 = vmul.f32 %v243_v16, %v239_v20  ;;  %v257_v24 = vmul.f32 %v256_v17, %v252_v21  ;;  %v266_v27 = vsel %vm263_vm3, %v475_v22, 0.0 }
  0x23   : > { %504 = vmatpush3.bf16.msra.mxu0 %v547_v10  ;;  %v271_v29 = vmul.f32 %v270_v25, %v266_v27 }
  0x24   : > { %505 = vmatprep.subr.bf16.mxu0 %v591_v1  ;;  %v258_v28 = vadd.f32 %v257_v24, %v244_v23 }
  0x26   : > { %v272_v31 = vadd.f32 %v271_v29, %v258_v28 }
  0x27   : > { %506 = vmatpush3.bf16.msra.mxu0 %v548_v19 }
  0x28   : > { %507 = vmatprep.subr.bf16.mxu0 %v591_v1  ;;  %v273_v33 = vpack.c.bf16 %v272_v31, %v272_v31 }
  0x2b   : > { %508 = vmatpush3.bf16.msra.mxu0 %v549_v26 }
  0x2c   : > { %509 = vmatprep.subr.bf16.mxu0 %v591_v1 }
  0x2f   : > { %510 = vmatpush3.bf16.msra.mxu0 %v550_v30 }
  0x30   : > { %511 = vmatprep.subr.bf16.mxu0 %v591_v1 }
  0x33   : > { %512 = vmatpush3.bf16.msra.mxu0 %v551_v32 }
  0x36   : > { %514 = vmatmul.mubr.bf16.vlgmr.msra.gmra.mrb[0].mxu0 %v273_v33 }
 0x109   : > { %v379_v35 = vpop.f32.mrb[0].mxu0 }
 0x10a   : > { %v380_v36 = vadd.f32 %v476_v34, %v379_v35  ;;  %v515_v37 = vpop.f32.mrb[1].mxu0 }
 0x10b   : > { %v382_v38 = vpop.f32.mrb[2].mxu0 }
 0x10c   : > { %v385_v39 = vmax.f32 %v380_v36, 0.0  ;;  %v516_v40 = vpop.f32.mrb[3].mxu0 }
 0x10e   : > { %386 = vst [vmem:[%s222_s8] sm:$0xff] %v385_v39 }
 0x10f PF: > { %s21_s25 = sadd.s32 1, %s588_s25   ;;  %s699_s23 = smov %s584_s24 }
 0x110   : > { %p18_p10 = scmp.ge.s32.totalorder %s21_s25, 4   ;;  %s700_s24 = smov %s702_s0 }
 0x112   :  { %20 = sbr.rel (!%p18_p10) target bundleno = 17 (0x11), region = 69 }

// kernel: quartznet_forward.9
= control target key start
LH: loop header
LB: loop body
LE: loop exit
PB: predicated region body
PF: predicated region fallthrough
CT: control target
= control target key end

     0   :  { %s692_s0 = inlined_call_operand.vmem [shape: s32[2], index: 0, kind: input, shape index: {}]   ;;  %s693_s1 = inlined_call_operand.vmem [shape: f32[2,1,16,128], index: 1, kind: input, shape index: {}]   ;;  %s694_s2 = inlined_call_operand.vmem [shape: f32[3,128], index: 2, kind: input, shape index: {}]   ;;  %s695_s3 = inlined_call_operand.vmem [shape: bf16[128,128], index: 3, kind: input, shape index: {}]   ;;  %s696_s4 = inlined_call_operand.vmem [shape: f32[1,128], index: 4, kind: input, shape index: {}]   ;;  %s697_s5 = inlined_call_operand.vmem [shape: f32[2,8,128], index: 5, kind: output, shape index: {}]  }
   0x1   :  { %s10_s20 = sshll.u32 %s692_s0, 4  ;;  %s11_s20 = int_to_ptr.vmem [resolvable:$true] %s10_s20 }
   0x2   :  { %s551_s21 = scalar_lea.vmem %s11_s20, 16  ;;  %p556_p1 = scmp.lt.s32.totalorder %s11_s20, %s11_s20 }
   0x3   :  { %p552_p0 = scmp.ne.s32.totalorder %s11_s20, %s551_s21  ;;  %p557_p2 = scmp.lt.s32.totalorder %s551_s21, %s551_s21 }
   0x5   :  { %p558_p3 = por %p557_p2, %p556_p1 }
   0x7   :  { %p559_p4 = pnand %p558_p3, %p552_p0 }
   0x9   :  { %562 = shalt.err (!%p559_p4)  }
   0xa   :  { %s589_s22 = smov [#allocation3]  }
   0xb   :  { %13 = dma.vmem_to_smem %s11_s20, 16, %s589_s22, [#allocation2] }
   0xc   :  { %575 = dma.done.wait [#allocation2], 16 }
   0xd   :  { %576 = vsyncadd [#allocation2], 4294967280 }
   0xe   :  { %15 = sfence }
   0xf   :  { %s625_s23 = smov 0   ;;  %s627_s24 = smov 0  }
  0x10   :  { %s629_s25 = smov 0  }
  0x11 LB: > { %s33_s0 = sadd.s32 1, %s583_s24  ;;  %p469_p5 = scmp.ge.s32.totalorder %s587_s25, 1  ;;  %s587_s25 = sphi %s629_s25, %s21_s25   ;;  %s583_s24 = sphi %s627_s24, %s699_s24   ;;  %s579_s23 = sphi %s625_s23, %s698_s23  }
  0x12   : > { %p35_p6 = scmp.ge.s32.totalorder %s33_s0, 2  ;;  %p183_p7 = scmp.lt.s32.totalorder %s587_s25, 3 }
  0x14   : > { %s701_s0 = smov (%p35_p6, %s33_s0), 0  ;;  %p184_p8 = pnand %p469_p5, %p183_p7 }
  0x15   : > { %v543_v0 = vld [vmem:[%s695_s3] sm:$0xff] (!%p184_p8)   ;;  %v590_v1 = vmov (!%p184_p8), 0.0   ;;  %v227_v2 = vlaneseq (!%p184_p8)  ;;  %v544_v3 = vld [vmem:[%s695_s3 + $0x8] sm:$0xff] (!%p184_p8)   ;;  %vm591_vm0 = vmmov (!%p184_p8), 0   ;;  %p211_p9 = scmp.lt.s32.totalorder (!%p184_p8), %s579_s23, 1  ;;  %s225_s30 = sld [smem:[#allocation3 + %s579_s23]] (!%p184_p8) }
  0x16   : > { %187 = sbr.rel (%p184_p8) target bundleno = 271 (0x10f), region = 36  ;;  %496 = vmatprep.subr.bf16.mxu0 (!%p184_p8), %v590_v1  ;;  %512 = vmatprep.mubr.msk.bf16.mxu0 (!%p184_p8), %vm591_vm0, %v590_v1  ;;  %v545_v5 = vld [vmem:[%s695_s3 + $0x10] sm:$0xff] (!%p184_p8)   ;;  %v546_v9 = vld [vmem:[%s695_s3 + $0x18] sm:$0xff] (!%p184_p8)   ;;  %v231_v10 = vld [vmem:[%s694_s2] sm:$0x7] (!%p184_p8) }
  0x17   : > { %497 = vmatpush3.bf16.msra.mxu0 (!%p184_p8), %v543_v0  ;;  %v228_v4 = vshrl.u32 (!%p184_p8), %v227_v2, 7  ;;  %v547_v18 = vld [vmem:[%s695_s3 + $0x20] sm:$0xff] (!%p184_p8)   ;;  %v548_v25 = vld [vmem:[%s695_s3 + $0x28] sm:$0xff] (!%p184_p8)   ;;  %v549_v29 = vld [vmem:[%s695_s3 + $0x30] sm:$0xff] (!%p184_p8)  }
  0x18   : > { %498 = vmatprep.subr.bf16.mxu0 (!%p184_p8), %v590_v1  ;;  %v550_v31 = vld [vmem:[%s695_s3 + $0x38] sm:$0xff] (!%p184_p8)   ;;  %v475_v33 = vld [vmem:[%s696_s4] ss:$0 sm:$0xff] (!%p184_p8) }
  0x19   : > { %v247_v6 = vadd.s32 (!%p184_p8), 1, %v228_v4  ;;  %v241_v7 = vsub.s32 (!%p184_p8), 0, %v228_v4  ;;  %v254_v8 = vsub.s32 (!%p184_p8), 1, %v228_v4  ;;  %v261_v14 = vadd.s32 (!%p184_p8), 2, %v228_v4 }
  0x1a   : > { %v268_v17 = vsub.s32 (!%p184_p8), 2, %v228_v4 }
  0x1b   : > { %499 = vmatpush3.bf16.msra.mxu0 (!%p184_p8), %v544_v3  ;;  %s226_s12 = sadd.s32 (!%p184_p8), 1, %s225_s30  ;;  %v242_v15 = vrot.slane (!%p184_p8), %v231_v10, %v241_v7  ;;  %v255_v16 = vrot.slane (!%p184_p8), %v231_v10, %v254_v8 }
  0x1c   : > { %500 = vmatprep.subr.bf16.mxu0 (!%p184_p8), %v590_v1  ;;  %v234_v11 = vstv (!%p184_p8), %s226_s12  ;;  %v269_v24 = vrot.slane (!%p184_p8), %v231_v10, %v268_v17 }
  0x1d   : > { %s703_s23 = smov (!%p211_p9, %s579_s23), 1  ;;  %vm235_vm1 = vcmp.lt.s32.totalorder %v228_v4, %v234_v11  ;;  %vm248_vm2 = vcmp.lt.s32.totalorder %v247_v6, %v234_v11  ;;  %vm262_vm3 = vcmp.lt.s32.totalorder %v261_v14, %v234_v11 }
  0x1e   : > { %s486_s8 = sshll.u32 %s703_s23, 4  ;;  %s472_s30 = sshll.u32 %s703_s23, 3 }
  0x1f   : > { %s215_s11 = scalar_lea.vmem %s693_s1, %s486_s8  ;;  %501 = vmatpush3.bf16.msra.mxu0 %v545_v5  ;;  %s222_s8 = scalar_lea.vmem %s697_s5, %s472_s30 }
  0x20   : > { %502 = vmatprep.subr.bf16.mxu0 %v590_v1  ;;  %v233_v12 = vld [vmem:[%s215_s11] sm:$0xff] }
  0x21   : > { %v473_v13 = vld [vmem:[%s215_s11 + $0x1] sm:$0xff]  ;;  %v238_v19 = vsel %vm235_vm1, %v233_v12, 0.0 }
  0x22   : > { %v251_v20 = vsel %vm248_vm2, %v473_v13, 0.0  ;;  %v474_v21 = vld [vmem:[%s215_s11 + $0x2] sm:$0xff]  ;;  %v243_v22 = vmul.f32 %v242_v15, %v238_v19 }
  0x23   : > { %503 = vmatpush3.bf16.msra.mxu0 %v546_v9  ;;  %v256_v23 = vmul.f32 %v255_v16, %v251_v20  ;;  %v265_v26 = vsel %vm262_vm3, %v474_v21, 0.0 }
  0x24   : > { %504 = vmatprep.subr.bf16.mxu0 %v590_v1  ;;  %v270_v28 = vmul.f32 %v269_v24, %v265_v26 }
  0x25   : > { %v257_v27 = vadd.f32 %v256_v23, %v243_v22 }
  0x27   : > { %505 = vmatpush3.bf16.msra.mxu0 %v547_v18  ;;  %v271_v30 = vadd.f32 %v270_v28, %v257_v27 }
  0x28   : > { %506 = vmatprep.subr.bf16.mxu0 %v590_v1 }
  0x29   : > { %v272_v32 = vpack.c.bf16 %v271_v30, %v271_v30 }
  0x2b   : > { %507 = vmatpush3.bf16.msra.mxu0 %v548_v25 }
  0x2c   : > { %508 = vmatprep.subr.bf16.mxu0 %v590_v1 }
  0x2f   : > { %509 = vmatpush3.bf16.msra.mxu0 %v549_v29 }
  0x30   : > { %510 = vmatprep.subr.bf16.mxu0 %v590_v1 }
  0x33   : > { %511 = vmatpush3.bf16.msra.mxu0 %v550_v31 }
  0x36   : > { %513 = vmatmul.mubr.bf16.vlgmr.msra.gmra.mrb[0].mxu0 %v272_v32 }
 0x109   : > { %v378_v34 = vpop.f32.mrb[0].mxu0 }
 0x10a   : > { %v379_v35 = vadd.f32 %v475_v33, %v378_v34  ;;  %v514_v36 = vpop.f32.mrb[1].mxu0 }
 0x10b   : > { %v381_v37 = vpop.f32.mrb[2].mxu0 }
 0x10c   : > { %v384_v38 = vmax.f32 %v379_v35, 0.0  ;;  %v515_v39 = vpop.f32.mrb[3].mxu0 }
 0x10e   : > { %385 = vst [vmem:[%s222_s8] sm:$0xff] %v384_v38 }
 0x10f PF: > { %s21_s25 = sadd.s32 1, %s587_s25   ;;  %s698_s23 = smov %s583_s24 }
 0x110   : > { %p18_p10 = scmp.ge.s32.totalorder %s21_s25, 4   ;;  %s699_s24 = smov %s701_s0 }
 0x112   :  { %20 = sbr.rel (!%p18_p10) target bundleno = 17 (0x11), region = 69 }

// kernel: quartznet_forward.13
= control target key start
LH: loop header
LB: loop body
LE: loop exit
PB: predicated region body
PF: predicated region fallthrough
CT: control target
= control target key end

     0   :  { %s692_s0 = inlined_call_operand.vmem [shape: s32[2], index: 0, kind: input, shape index: {}]   ;;  %s693_s1 = inlined_call_operand.vmem [shape: f32[2,1,16,128], index: 1, kind: input, shape index: {}]   ;;  %s694_s2 = inlined_call_operand.vmem [shape: f32[3,128], index: 2, kind: input, shape index: {}]   ;;  %s695_s3 = inlined_call_operand.vmem [shape: bf16[128,128], index: 3, kind: input, shape index: {}]   ;;  %s696_s4 = inlined_call_operand.vmem [shape: f32[1,128], index: 4, kind: input, shape index: {}]   ;;  %s697_s5 = inlined_call_operand.vmem [shape: f32[2,8,128], index: 5, kind: output, shape index: {}]  }
   0x1   :  { %s10_s20 = sshll.u32 %s692_s0, 4  ;;  %s11_s20 = int_to_ptr.vmem [resolvable:$true] %s10_s20 }
   0x2   :  { %s551_s21 = scalar_lea.vmem %s11_s20, 16  ;;  %p556_p1 = scmp.lt.s32.totalorder %s11_s20, %s11_s20 }
   0x3   :  { %p552_p0 = scmp.ne.s32.totalorder %s11_s20, %s551_s21  ;;  %p557_p2 = scmp.lt.s32.totalorder %s551_s21, %s551_s21 }
   0x5   :  { %p558_p3 = por %p557_p2, %p556_p1 }
   0x7   :  { %p559_p4 = pnand %p558_p3, %p552_p0 }
   0x9   :  { %562 = shalt.err (!%p559_p4)  }
   0xa   :  { %s589_s22 = smov [#allocation3]  }
   0xb   :  { %13 = dma.vmem_to_smem %s11_s20, 16, %s589_s22, [#allocation2] }
   0xc   :  { %575 = dma.done.wait [#allocation2], 16 }
   0xd   :  { %576 = vsyncadd [#allocation2], 4294967280 }
   0xe   :  { %15 = sfence }
   0xf   :  { %s625_s23 = smov 0   ;;  %s627_s24 = smov 0  }
  0x10   :  { %s629_s25 = smov 0  }
  0x11 LB: > { %s33_s0 = sadd.s32 1, %s583_s24  ;;  %p469_p5 = scmp.ge.s32.totalorder %s587_s25, 1  ;;  %s587_s25 = sphi %s629_s25, %s21_s25   ;;  %s583_s24 = sphi %s627_s24, %s699_s24   ;;  %s579_s23 = sphi %s625_s23, %s698_s23  }
  0x12   : > { %p35_p6 = scmp.ge.s32.totalorder %s33_s0, 2  ;;  %p183_p7 = scmp.lt.s32.totalorder %s587_s25, 3 }
  0x14   : > { %s701_s0 = smov (%p35_p6, %s33_s0), 0  ;;  %p184_p8 = pnand %p469_p5, %p183_p7 }
  0x15   : > { %v543_v0 = vld [vmem:[%s695_s3] sm:$0xff] (!%p184_p8)   ;;  %v590_v1 = vmov (!%p184_p8), 0.0   ;;  %v227_v2 = vlaneseq (!%p184_p8)  ;;  %v544_v3 = vld [vmem:[%s695_s3 + $0x8] sm:$0xff] (!%p184_p8)   ;;  %vm591_vm0 = vmmov (!%p184_p8), 0   ;;  %p211_p9 = scmp.lt.s32.totalorder (!%p184_p8), %s579_s23, 1  ;;  %s225_s30 = sld [smem:[#allocation3 + %s579_s23]] (!%p184_p8) }
  0x16   : > { %187 = sbr.rel (%p184_p8) target bundleno = 271 (0x10f), region = 36  ;;  %496 = vmatprep.subr.bf16.mxu0 (!%p184_p8), %v590_v1  ;;  %512 = vmatprep.mubr.msk.bf16.mxu0 (!%p184_p8), %vm591_vm0, %v590_v1  ;;  %v545_v5 = vld [vmem:[%s695_s3 + $0x10] sm:$0xff] (!%p184_p8)   ;;  %v546_v9 = vld [vmem:[%s695_s3 + $0x18] sm:$0xff] (!%p184_p8)   ;;  %v231_v10 = vld [vmem:[%s694_s2] sm:$0x7] (!%p184_p8) }
  0x17   : > { %497 = vmatpush3.bf16.msra.mxu0 (!%p184_p8), %v543_v0  ;;  %v228_v4 = vshrl.u32 (!%p184_p8), %v227_v2, 7  ;;  %v547_v18 = vld [vmem:[%s695_s3 + $0x20] sm:$0xff] (!%p184_p8)   ;;  %v548_v25 = vld [vmem:[%s695_s3 + $0x28] sm:$0xff] (!%p184_p8)   ;;  %v549_v29 = vld [vmem:[%s695_s3 + $0x30] sm:$0xff] (!%p184_p8)  }
  0x18   : > { %498 = vmatprep.subr.bf16.mxu0 (!%p184_p8), %v590_v1  ;;  %v550_v31 = vld [vmem:[%s695_s3 + $0x38] sm:$0xff] (!%p184_p8)   ;;  %v475_v33 = vld [vmem:[%s696_s4] ss:$0 sm:$0xff] (!%p184_p8) }
  0x19   : > { %v247_v6 = vadd.s32 (!%p184_p8), 2, %v228_v4  ;;  %v241_v7 = vsub.s32 (!%p184_p8), 0, %v228_v4  ;;  %v254_v8 = vsub.s32 (!%p184_p8), 1, %v228_v4  ;;  %v261_v14 = vadd.s32 (!%p184_p8), 4, %v228_v4 }
  0x1a   : > { %v268_v17 = vsub.s32 (!%p184_p8), 2, %v228_v4 }
  0x1b   : > { %499 = vmatpush3.bf16.msra.mxu0 (!%p184_p8), %v544_v3  ;;  %s226_s12 = sadd.s32 (!%p184_p8), 2, %s225_s30  ;;  %v242_v15 = vrot.slane (!%p184_p8), %v231_v10, %v241_v7  ;;  %v255_v16 = vrot.slane (!%p184_p8), %v231_v10, %v254_v8 }
  0x1c   : > { %500 = vmatprep.subr.bf16.mxu0 (!%p184_p8), %v590_v1  ;;  %v234_v11 = vstv (!%p184_p8), %s226_s12  ;;  %v269_v24 = vrot.slane (!%p184_p8), %v231_v10, %v268_v17 }
  0x1d   : > { %s703_s23 = smov (!%p211_p9, %s579_s23), 1  ;;  %vm235_vm1 = vcmp.lt.s32.totalorder %v228_v4, %v234_v11  ;;  %vm248_vm2 = vcmp.lt.s32.totalorder %v247_v6, %v234_v11  ;;  %vm262_vm3 = vcmp.lt.s32.totalorder %v261_v14, %v234_v11 }
  0x1e   : > { %s486_s8 = sshll.u32 %s703_s23, 4  ;;  %s472_s30 = sshll.u32 %s703_s23, 3 }
  0x1f   : > { %s215_s11 = scalar_lea.vmem %s693_s1, %s486_s8  ;;  %501 = vmatpush3.bf16.msra.mxu0 %v545_v5  ;;  %s222_s8 = scalar_lea.vmem %s697_s5, %s472_s30 }
  0x20   : > { %502 = vmatprep.subr.bf16.mxu0 %v590_v1  ;;  %v233_v12 = vld [vmem:[%s215_s11] sm:$0xff] }
  0x21   : > { %v473_v13 = vld [vmem:[%s215_s11 + $0x2] sm:$0xff]  ;;  %v238_v19 = vsel %vm235_vm1, %v233_v12, 0.0 }
  0x22   : > { %v251_v20 = vsel %vm248_vm2, %v473_v13, 0.0  ;;  %v474_v21 = vld [vmem:[%s215_s11 + $0x4] sm:$0xff]  ;;  %v243_v22 = vmul.f32 %v242_v15, %v238_v19 }
  0x23   : > { %503 = vmatpush3.bf16.msra.mxu0 %v546_v9  ;;  %v256_v23 = vmul.f32 %v255_v16, %v251_v20  ;;  %v265_v26 = vsel %vm262_vm3, %v474_v21, 0.0 }
  0x24   : > { %504 = vmatprep.subr.bf16.mxu0 %v590_v1  ;;  %v270_v28 = vmul.f32 %v269_v24, %v265_v26 }
  0x25   : > { %v257_v27 = vadd.f32 %v256_v23, %v243_v22 }
  0x27   : > { %505 = vmatpush3.bf16.msra.mxu0 %v547_v18  ;;  %v271_v30 = vadd.f32 %v270_v28, %v257_v27 }
  0x28   : > { %506 = vmatprep.subr.bf16.mxu0 %v590_v1 }
  0x29   : > { %v272_v32 = vpack.c.bf16 %v271_v30, %v271_v30 }
  0x2b   : > { %507 = vmatpush3.bf16.msra.mxu0 %v548_v25 }
  0x2c   : > { %508 = vmatprep.subr.bf16.mxu0 %v590_v1 }
  0x2f   : > { %509 = vmatpush3.bf16.msra.mxu0 %v549_v29 }
  0x30   : > { %510 = vmatprep.subr.bf16.mxu0 %v590_v1 }
  0x33   : > { %511 = vmatpush3.bf16.msra.mxu0 %v550_v31 }
  0x36   : > { %513 = vmatmul.mubr.bf16.vlgmr.msra.gmra.mrb[0].mxu0 %v272_v32 }
 0x109   : > { %v378_v34 = vpop.f32.mrb[0].mxu0 }
 0x10a   : > { %v379_v35 = vadd.f32 %v475_v33, %v378_v34  ;;  %v514_v36 = vpop.f32.mrb[1].mxu0 }
 0x10b   : > { %v381_v37 = vpop.f32.mrb[2].mxu0 }
 0x10c   : > { %v384_v38 = vmax.f32 %v379_v35, 0.0  ;;  %v515_v39 = vpop.f32.mrb[3].mxu0 }
 0x10e   : > { %385 = vst [vmem:[%s222_s8] sm:$0xff] %v384_v38 }
 0x10f PF: > { %s21_s25 = sadd.s32 1, %s587_s25   ;;  %s698_s23 = smov %s583_s24 }
 0x110   : > { %p18_p10 = scmp.ge.s32.totalorder %s21_s25, 4   ;;  %s699_s24 = smov %s701_s0 }
 0x112   :  { %20 = sbr.rel (!%p18_p10) target bundleno = 17 (0x11), region = 69 }

// kernel: quartznet_forward.10
= control target key start
LH: loop header
LB: loop body
LE: loop exit
PB: predicated region body
PF: predicated region fallthrough
CT: control target
= control target key end

     0   :  { %s1055_s0 = inlined_call_operand.vmem [shape: s32[2], index: 0, kind: input, shape index: {}]   ;;  %s1056_s1 = inlined_call_operand.vmem [shape: f32[2,1,16,128], index: 1, kind: input, shape index: {}]   ;;  %s1057_s2 = inlined_call_operand.vmem [shape: f32[3,128], index: 2, kind: input, shape index: {}]   ;;  %s1058_s3 = inlined_call_operand.vmem [shape: bf16[128,128], index: 3, kind: input, shape index: {}]   ;;  %s1059_s4 = inlined_call_operand.vmem [shape: f32[1,128], index: 4, kind: input, shape index: {}]   ;;  %s1060_s5 = inlined_call_operand.vmem [shape: f32[2,8,128], index: 5, kind: input, shape index: {}]   ;;  %s1061_s6 = inlined_call_operand.vmem [shape: bf16[128,128], index: 6, kind: input, shape index: {}]   ;;  %s1062_s7 = inlined_call_operand.vmem [shape: f32[1,128], index: 7, kind: input, shape index: {}]   ;;  %s1063_s8 = inlined_call_operand.vmem [shape: f32[2,8,128], index: 8, kind: output, shape index: {}]  }
   0x1   :  { %s13_s29 = sshll.u32 %s1055_s0, 4  ;;  %s14_s29 = int_to_ptr.vmem [resolvable:$true] %s13_s29 }
   0x2   :  { %s834_s30 = scalar_lea.vmem %s14_s29, 16  ;;  %p839_p1 = scmp.lt.s32.totalorder %s14_s29, %s14_s29 }
   0x3   :  { %p835_p0 = scmp.ne.s32.totalorder %s14_s29, %s834_s30  ;;  %p840_p2 = scmp.lt.s32.totalorder %s834_s30, %s834_s30 }
   0x5   :  { %p841_p3 = por %p840_p2, %p839_p1 }
   0x7   :  { %p842_p4 = pnand %p841_p3, %p835_p0 }
   0x9   :  { %845 = shalt.err (!%p842_p4)  }
   0xa   :  { %s872_s9 = smov [#allocation3]  }
   0xb   :  { %16 = dma.vmem_to_smem %s14_s29, 16, %s872_s9, [#allocation2] }
   0xc   :  { %858 = dma.done.wait [#allocation2], 16 }
   0xd   :  { %859 = vsyncadd [#allocation2], 4294967280 }
   0xe   :  { %18 = sfence }
   0xf   :  { %s923_s10 = smov 0   ;;  %s925_s11 = smov 0  }
  0x10   :  { %s927_s12 = smov 0  }
  0x11 LB: > { %s36_s0 = sadd.s32 1, %s866_s11  ;;  %p702_p5 = scmp.ge.s32.totalorder %s870_s12, 1  ;;  %s870_s12 = sphi %s927_s12, %s24_s12   ;;  %s866_s11 = sphi %s925_s11, %s1065_s11   ;;  %s862_s10 = sphi %s923_s10, %s1064_s10  }
  0x12   : > { %p38_p6 = scmp.ge.s32.totalorder %s36_s0, 2  ;;  %p267_p7 = scmp.lt.s32.totalorder %s870_s12, 3 }
  0x14   : > { %s1067_s0 = smov (%p38_p6, %s36_s0), 0  ;;  %p268_p8 = pnand %p702_p5, %p267_p7 }
  0x15   : > { %v818_v0 = vld [vmem:[%s1058_s3] sm:$0xff] (!%p268_p8)   ;;  %v873_v1 = vmov (!%p268_p8), 0.0   ;;  %v820_v3 = vld [vmem:[%s1058_s3 + $0x8] sm:$0xff] (!%p268_p8)   ;;  %vm874_vm0 = vmmov (!%p268_p8), 0   ;;  %p305_p9 = scmp.lt.s32.totalorder (!%p268_p8), %s862_s10, 1  ;;  %v325_v4 = vlaneseq (!%p268_p8)  ;;  %s957_s21 = sld [smem:[#allocation3 + %s862_s10]] (!%p268_p8) }
  0x16   : > { %271 = sbr.rel (%p268_p8) target bundleno = 275 (0x113), region = 48  ;;  %751 = vmatprep.subr.bf16.mxu0 (!%p268_p8), %v873_v1  ;;  %771 = vmatprep.subr.bf16.mxu1 (!%p268_p8), %v873_v1  ;;  %v819_v2 = vld [vmem:[%s1061_s6] sm:$0xff] (!%p268_p8)   ;;  %v821_v5 = vld [vmem:[%s1061_s6 + $0x8] sm:$0xff] (!%p268_p8)   ;;  %v822_v6 = vld [vmem:[%s1058_s3 + $0x10] sm:$0xff] (!%p268_p8)  }
  0x17   : > { %752 = vmatpush3.bf16.msra.mxu0 (!%p268_p8), %v818_v0  ;;  %767 = vmatprep.mubr.msk.bf16.mxu0 (!%p268_p8), %vm874_vm0, %v873_v1  ;;  %v966_v7 = vshrl.u32 (!%p268_p8), %v325_v4, 7  ;;  %v823_v8 = vld [vmem:[%s1061_s6 + $0x10] sm:$0xff] (!%p268_p8)   ;;  %v824_v9 = vld [vmem:[%s1058_s3 + $0x18] sm:$0xff] (!%p268_p8)   ;;  %v826_v16 = vld [vmem:[%s1058_s3 + $0x20] sm:$0xff] (!%p268_p8)  }
  0x18   : > { %772 = vmatpush3.bf16.msra.mxu1 (!%p268_p8), %v819_v2  ;;  %753 = vmatprep.subr.bf16.mxu0 (!%p268_p8), %v873_v1  ;;  %v825_v11 = vld [vmem:[%s1061_s6 + $0x18] sm:$0xff] (!%p268_p8)   ;;  %v827_v18 = vld [vmem:[%s1061_s6 + $0x20] sm:$0xff] (!%p268_p8)   ;;  %v828_v27 = vld [vmem:[%s1058_s3 + $0x28] sm:$0xff] (!%p268_p8)  }
  0x19   : > { %773 = vmatprep.subr.bf16.mxu1 (!%p268_p8), %v873_v1  ;;  %787 = vmatprep.mubr.msk.bf16.mxu1 (!%p268_p8), %vm874_vm0, %v873_v1  ;;  %v345_v10 = vadd.s32 (!%p268_p8), 1, %v966_v7  ;;  %v359_v13 = vadd.s32 (!%p268_p8), 2, %v966_v7  ;;  %v339_v14 = vsub.s32 (!%p268_p8), 0, %v966_v7  ;;  %v352_v15 = vsub.s32 (!%p268_p8), 1, %v966_v7  ;;  %v329_v19 = vld [vmem:[%s1057_s2] sm:$0x7] (!%p268_p8) }
  0x1a   : > { %v366_v17 = vsub.s32 (!%p268_p8), 2, %v966_v7  ;;  %v829_v30 = vld [vmem:[%s1061_s6 + $0x28] sm:$0xff] (!%p268_p8)   ;;  %v830_v35 = vld [vmem:[%s1058_s3 + $0x30] sm:$0xff] (!%p268_p8)   ;;  %v832_v39 = vld [vmem:[%s1058_s3 + $0x38] sm:$0xff] (!%p268_p8)  }
  0x1b   : > { %754 = vmatpush3.bf16.msra.mxu0 (!%p268_p8), %v820_v3  ;;  %s324_s28 = sadd.s32 (!%p268_p8), 1, %s957_s21  ;;  %v340_v23 = vrot.slane (!%p268_p8), %v329_v19, %v339_v14  ;;  %v353_v25 = vrot.slane (!%p268_p8), %v329_v19, %v352_v15  ;;  %v831_v36 = vld [vmem:[%s1061_s6 + $0x30] sm:$0xff] (!%p268_p8)   ;;  %v484_v38 = vstv (!%p268_p8), %s957_s21  ;;  %v833_v40 = vld [vmem:[%s1061_s6 + $0x38] sm:$0xff] (!%p268_p8)   ;;  %v709_v44 = vld [vmem:[%s1059_s4] ss:$0 sm:$0xff] (!%p268_p8) }
  0x1c   : > { %774 = vmatpush3.bf16.msra.mxu1 (!%p268_p8), %v821_v5  ;;  %755 = vmatprep.subr.bf16.mxu0 (!%p268_p8), %v873_v1  ;;  %v332_v12 = vstv (!%p268_p8), %s324_s28  ;;  %v367_v29 = vrot.slane (!%p268_p8), %v329_v19, %v366_v17  ;;  %vm485_vm4 = vcmp.lt.s32.totalorder (!%p268_p8), %v966_v7, %v484_v38  ;;  %v729_v49 = vld [vmem:[%s1062_s7] ss:$0 sm:$0xff] (!%p268_p8) }
  0x1d   : > { %s1069_s10 = smov (!%p305_p9, %s862_s10), 1  ;;  %775 = vmatprep.subr.bf16.mxu1 %v873_v1  ;;  %vm333_vm1 = vcmp.lt.s32.totalorder %v966_v7, %v332_v12  ;;  %vm346_vm2 = vcmp.lt.s32.totalorder %v345_v10, %v332_v12  ;;  %vm360_vm3 = vcmp.lt.s32.totalorder %v359_v13, %v332_v12  ;;  %vm726_vm5 = vmpackc.low %vm485_vm4, %vm485_vm4 }
  0x1e   : > { %s732_s29 = sshll.u32 %s1069_s10, 4  ;;  %s705_s27 = sshll.u32 %s1069_s10, 3 }
  0x1f   : > { %756 = vmatpush3.bf16.msra.mxu0 %v822_v6  ;;  %s309_s15 = scalar_lea.vmem %s1056_s1, %s732_s29  ;;  %s320_s26 = scalar_lea.vmem %s1063_s8, %s705_s27 }
  0x20   : > { %776 = vmatpush3.bf16.msra.mxu1 %v823_v8  ;;  %757 = vmatprep.subr.bf16.mxu0 %v873_v1  ;;  %v331_v20 = vld [vmem:[%s309_s15] sm:$0xff] }
  0x21   : > { %777 = vmatprep.subr.bf16.mxu1 %v873_v1  ;;  %v707_v21 = vld [vmem:[%s309_s15 + $0x1] sm:$0xff]  ;;  %v336_v22 = vsel %vm333_vm1, %v331_v20, 0.0 }
  0x22   : > { %v349_v24 = vsel %vm346_vm2, %v707_v21, 0.0  ;;  %v708_v26 = vld [vmem:[%s309_s15 + $0x2] sm:$0xff]  ;;  %v341_v31 = vmul.f32 %v340_v23, %v336_v22  ;;  %s313_s15 = scalar_lea.vmem %s1060_s5, %s705_s27 }
  0x23   : > { %758 = vmatpush3.bf16.msra.mxu0 %v824_v9  ;;  %v363_v28 = vsel %vm360_vm3, %v708_v26, 0.0  ;;  %v354_v32 = vmul.f32 %v353_v25, %v349_v24  ;;  %v483_v41 = vld [vmem:[%s313_s15] sm:$0xff] }
  0x24   : > { %778 = vmatpush3.bf16.msra.mxu1 %v825_v11  ;;  %759 = vmatprep.subr.bf16.mxu0 %v873_v1  ;;  %v368_v34 = vmul.f32 %v367_v29, %v363_v28  ;;  %v727_v43 = vpack.c.bf16 %v483_v41, %v483_v41 }
  0x25   : > { %779 = vmatprep.subr.bf16.mxu1 %v873_v1  ;;  %v355_v33 = vadd.f32 %v354_v32, %v341_v31 }
  0x27   : > { %760 = vmatpush3.bf16.msra.mxu0 %v826_v16  ;;  %v369_v37 = vadd.f32 %v368_v34, %v355_v33 }
  0x28   : > { %780 = vmatpush3.bf16.msra.mxu1 %v827_v18  ;;  %761 = vmatprep.subr.bf16.mxu0 %v873_v1 }
  0x29   : > { %781 = vmatprep.subr.bf16.mxu1 %v873_v1  ;;  %v370_v42 = vpack.c.bf16 %v369_v37, %v369_v37 }
  0x2b   : > { %762 = vmatpush3.bf16.msra.mxu0 %v828_v27 }
  0x2c   : > { %782 = vmatpush3.bf16.msra.mxu1 %v829_v30  ;;  %763 = vmatprep.subr.bf16.mxu0 %v873_v1 }
  0x2d   : > { %783 = vmatprep.subr.bf16.mxu1 %v873_v1 }
  0x2f   : > { %764 = vmatpush3.bf16.msra.mxu0 %v830_v35 }
  0x30   : > { %784 = vmatpush3.bf16.msra.mxu1 %v831_v36  ;;  %765 = vmatprep.subr.bf16.mxu0 %v873_v1 }
  0x31   : > { %785 = vmatprep.subr.bf16.mxu1 %v873_v1 }
  0x33   : > { %766 = vmatpush3.bf16.msra.mxu0 %v832_v39 }
  0x34   : > { %786 = vmatpush3.bf16.msra.mxu1 %v833_v40 }
  0x36   : > { %768 = vmatmul.mubr.bf16.vlgmr.msra.gmra.mrb[0].mxu0 %v370_v42 }
  0x37   : > { %788 = vmatmul.mubr.msk.bf16.vlgmr.msra.gmra.mrb[0].mxu1 %vm726_vm5, %v727_v43 }
 0x109   : > { %v476_v45 = vpop.f32.mrb[0].mxu0 }
 0x10a   : > { %v477_v46 = vadd.f32 %v709_v44, %v476_v45  ;;  %v588_v47 = vpop.f32.mrb[0].mxu1  ;;  %v769_v48 = vpop.f32.mrb[1].mxu0 }
 0x10b   : > { %v789_v50 = vpop.f32.mrb[1].mxu1  ;;  %v479_v51 = vpop.f32.mrb[2].mxu0 }
 0x10c   : > { %v594_v52 = vadd.f32 %v588_v47, %v477_v46  ;;  %v591_v53 = vpop.f32.mrb[2].mxu1  ;;  %v770_v54 = vpop.f32.mrb[3].mxu0 }
 0x10d   : > { %v790_v55 = vpop.f32.mrb[3].mxu1 }
 0x10e   : > { %v602_v56 = vadd.f32 %v729_v49, %v594_v52 }
 0x110   : > { %v603_v57 = vmax.f32 %v602_v56, 0.0 }
 0x112   : > { %604 = vst [vmem:[%s320_s26] sm:$0xff] %v603_v57 }
 0x113 PF: > { %s24_s12 = sadd.s32 1, %s870_s12   ;;  %s1064_s10 = smov %s866_s11 }
 0x114   : > { %p21_p10 = scmp.ge.s32.totalorder %s24_s12, 4   ;;  %s1065_s11 = smov %s1067_s0 }
 0x116   :  { %23 = sbr.rel (!%p21_p10) target bundleno = 17 (0x11), region = 85 }

// kernel: quartznet_forward.14
= control target key start
LH: loop header
LB: loop body
LE: loop exit
PB: predicated region body
PF: predicated region fallthrough
CT: control target
= control target key end

     0   :  { %s608_s0 = inlined_call_operand.vmem [shape: s32[2], index: 0, kind: input, shape index: {}]   ;;  %s609_s1 = inlined_call_operand.vmem [shape: f32[2,1,8,128], index: 1, kind: input, shape index: {}]   ;;  %s610_s2 = inlined_call_operand.vmem [shape: bf16[128,128], index: 2, kind: input, shape index: {}]   ;;  %s611_s3 = inlined_call_operand.vmem [shape: f32[1,128], index: 3, kind: input, shape index: {}]   ;;  %s612_s4 = inlined_call_operand.vmem [shape: f32[2,8,128], index: 4, kind: output, shape index: {}]  }
   0x1   :  { %s9_s17 = sshll.u32 %s608_s0, 4  ;;  %s10_s17 = int_to_ptr.vmem [resolvable:$true] %s9_s17 }
   0x2   :  { %s479_s18 = scalar_lea.vmem %s10_s17, 16  ;;  %p484_p1 = scmp.lt.s32.totalorder %s10_s17, %s10_s17 }
   0x3   :  { %p480_p0 = scmp.ne.s32.totalorder %s10_s17, %s479_s18  ;;  %p485_p2 = scmp.lt.s32.totalorder %s479_s18, %s479_s18 }
   0x5   :  { %p486_p3 = por %p485_p2, %p484_p1 }
   0x7   :  { %p487_p4 = pnand %p486_p3, %p480_p0 }
   0x9   :  { %490 = shalt.err (!%p487_p4)  }
   0xa   :  { %s517_s19 = smov [#allocation3]  }
   0xb   :  { %12 = dma.vmem_to_smem %s10_s17, 16, %s517_s19, [#allocation2] }
   0xc   :  { %503 = dma.done.wait [#allocation2], 16 }
   0xd   :  { %504 = vsyncadd [#allocation2], 4294967280 }
   0xe   :  { %14 = sfence }
   0xf   :  { %s548_s20 = smov 0   ;;  %s550_s21 = smov 0  }
  0x10   :  { %s552_s22 = smov 0  }
  0x11 LB: > { %s32_s0 = sadd.s32 1, %s511_s21  ;;  %p398_p5 = scmp.ge.s32.totalorder %s515_s22, 1  ;;  %s515_s22 = sphi %s552_s22, %s20_s22   ;;  %s511_s21 = sphi %s550_s21, %s614_s21   ;;  %s507_s20 = sphi %s548_s20, %s613_s20  }
  0x12   : > { %p34_p6 = scmp.ge.s32.totalorder %s32_s0, 2  ;;  %p157_p7 = scmp.lt.s32.totalorder %s515_s22, 3 }
  0x14   : > { %s616_s0 = smov (%p34_p6, %s32_s0), 0  ;;  %p158_p8 = pnand %p398_p5, %p157_p7 }
  0x15   : > { %v471_v0 = vld [vmem:[%s610_s2] sm:$0xff] (!%p158_p8)   ;;  %v518_v1 = vmov (!%p158_p8), 0.0   ;;  %v472_v2 = vld [vmem:[%s610_s2 + $0x8] sm:$0xff] (!%p158_p8)   ;;  %vm519_vm0 = vmmov (!%p158_p8), 0   ;;  %v473_v3 = vld [vmem:[%s610_s2 + $0x10] sm:$0xff] (!%p158_p8)   ;;  %p182_p9 = scmp.lt.s32.totalorder (!%p158_p8), %s507_s20, 1  ;;  %v196_v7 = vlaneseq (!%p158_p8) }
  0x16   : > { %161 = sbr.rel (%p158_p8) target bundleno = 271 (0x10f), region = 32  ;;  %424 = vmatprep.subr.bf16.mxu0 (!%p158_p8), %v518_v1  ;;  %440 = vmatprep.mubr.msk.bf16.mxu0 (!%p158_p8), %vm519_vm0, %v518_v1  ;;  %v474_v4 = vld [vmem:[%s610_s2 + $0x18] sm:$0xff] (!%p158_p8)   ;;  %v475_v5 = vld [vmem:[%s610_s2 + $0x20] sm:$0xff] (!%p158_p8)   ;;  %s195_s7 = sld [smem:[#allocation3 + %s507_s20]] (!%p158_p8)  ;;  %v476_v6 = vld [vmem:[%s610_s2 + $0x28] sm:$0xff] (!%p158_p8)  }
  0x17   : > { %425 = vmatpush3.bf16.msra.mxu0 (!%p158_p8), %v471_v0  ;;  %v477_v8 = vld [vmem:[%s610_s2 + $0x30] sm:$0xff] (!%p158_p8)   ;;  %v197_v9 = vshrl.u32 (!%p158_p8), %v196_v7, 7  ;;  %v478_v11 = vld [vmem:[%s610_s2 + $0x38] sm:$0xff] (!%p158_p8)   ;;  %v401_v14 = vld [vmem:[%s611_s3] ss:$0 sm:$0xff] (!%p158_p8) }
  0x18   : > { %426 = vmatprep.subr.bf16.mxu0 (!%p158_p8), %v518_v1 }
  0x1b   : > { %427 = vmatpush3.bf16.msra.mxu0 (!%p158_p8), %v472_v2 }
  0x1c   : > { %428 = vmatprep.subr.bf16.mxu0 (!%p158_p8), %v518_v1  ;;  %v202_v10 = vstv (!%p158_p8), %s195_s7 }
  0x1d   : > { %s618_s20 = smov (!%p182_p9, %s507_s20), 1  ;;  %vm203_vm1 = vcmp.lt.s32.totalorder %v197_v9, %v202_v10 }
  0x1e   : > { %s399_s10 = sshll.u32 %s618_s20, 3  ;;  %vm410_vm2 = vmpackc.low %vm203_vm1, %vm203_vm1 }
  0x1f   : > { %429 = vmatpush3.bf16.msra.mxu0 %v473_v3  ;;  %s185_s15 = scalar_lea.vmem %s609_s1, %s399_s10  ;;  %s192_s24 = scalar_lea.vmem %s612_s4, %s399_s10 }
  0x20   : > { %430 = vmatprep.subr.bf16.mxu0 %v518_v1  ;;  %v201_v12 = vld [vmem:[%s185_s15] sm:$0xff] }
  0x21   : > { %v411_v13 = vpack.c.bf16 %v201_v12, %v201_v12 }
  0x23   : > { %431 = vmatpush3.bf16.msra.mxu0 %v474_v4 }
  0x24   : > { %432 = vmatprep.subr.bf16.mxu0 %v518_v1 }
  0x27   : > { %433 = vmatpush3.bf16.msra.mxu0 %v475_v5 }
  0x28   : > { %434 = vmatprep.subr.bf16.mxu0 %v518_v1 }
  0x2b   : > { %435 = vmatpush3.bf16.msra.mxu0 %v476_v6 }
  0x2c   : > { %436 = vmatprep.subr.bf16.mxu0 %v518_v1 }
  0x2f   : > { %437 = vmatpush3.bf16.msra.mxu0 %v477_v8 }
  0x30   : > { %438 = vmatprep.subr.bf16.mxu0 %v518_v1 }
  0x33   : > { %439 = vmatpush3.bf16.msra.mxu0 %v478_v11 }
  0x36   : > { %441 = vmatmul.mubr.msk.bf16.vlgmr.msra.gmra.mrb[0].mxu0 %vm410_vm2, %v411_v13 }
 0x109   : > { %v313_v15 = vpop.f32.mrb[0].mxu0 }
 0x10a   : > { %v314_v16 = vadd.f32 %v401_v14, %v313_v15  ;;  %v442_v17 = vpop.f32.mrb[1].mxu0 }
 0x10b   : > { %v316_v18 = vpop.f32.mrb[2].mxu0 }
 0x10c   : > { %v319_v19 = vmax.f32 %v314_v16, 0.0  ;;  %v443_v20 = vpop.f32.mrb[3].mxu0 }
 0x10e   : > { %320 = vst [vmem:[%s192_s24] sm:$0xff] %v319_v19 }
 0x10f PF: > { %s20_s22 = sadd.s32 1, %s515_s22   ;;  %s613_s20 = smov %s511_s21 }
 0x110   : > { %p17_p10 = scmp.ge.s32.totalorder %s20_s22, 4   ;;  %s614_s21 = smov %s616_s0 }
 0x112   :  { %19 = sbr.rel (!%p17_p10) target bundleno = 17 (0x11), region = 63 }

// kernel: quartznet_forward.15
= control target key start
LH: loop header
LB: loop body
LE: loop exit
PB: predicated region body
PF: predicated region fallthrough
CT: control target
= control target key end

     0   :  { %s797_s0 = inlined_call_operand.vmem [shape: s32[2], index: 0, kind: input, shape index: {}]   ;;  %s798_s1 = inlined_call_operand.vmem [shape: f32[2,1,8,128], index: 1, kind: input, shape index: {}]   ;;  %s799_s2 = inlined_call_operand.vmem [shape: bf16[128,128], index: 2, kind: input, shape index: {}]   ;;  %s800_s3 = inlined_call_operand.vmem [shape: f32[1,128], index: 3, kind: input, shape index: {}]   ;;  %s801_s4 = inlined_call_operand.hbm [shape: f32[2,8,128], index: 4, kind: output, shape index: {}]  }
   0x1   :  { %s9_s17 = sshll.u32 %s797_s0, 4  ;;  %s10_s17 = int_to_ptr.vmem [resolvable:$true] %s9_s17 }
   0x2   :  { %s531_s18 = scalar_lea.vmem %s10_s17, 16  ;;  %p536_p1 = scmp.lt.s32.totalorder %s10_s17, %s10_s17 }
   0x3   :  { %p532_p0 = scmp.ne.s32.totalorder %s10_s17, %s531_s18  ;;  %p537_p2 = scmp.lt.s32.totalorder %s531_s18, %s531_s18 }
   0x5   :  { %p538_p3 = por %p537_p2, %p536_p1 }
   0x7   :  { %p539_p4 = pnand %p538_p3, %p532_p0 }
   0x9   :  { %542 = shalt.err (!%p539_p4)  }
   0xa   :  { %s625_s19 = smov [#allocation3]  }
   0xb   :  { %12 = dma.vmem_to_smem %s10_s17, 16, %s625_s19, [#allocation2] }
   0xc   :  { %595 = dma.done.wait [#allocation2], 16 }
   0xd   :  { %596 = vsyncadd [#allocation2], 4294967280 }
   0xe   :  { %14 = sfence }
   0xf   :  { %15 = vsyncpa [#allocation5], 0 }
  0x10   :  { %17 = vsyncpa [#allocation5 + $0x1], 0  ;;  %s657_s20 = smov 0   ;;  %s659_s21 = smov 0  }
  0x11   :  { %s661_s0 = smov 0   ;;  %s663_s22 = smov 0  }
  0x12   :  { %s665_s23 = smov 0   ;;  %s667_s24 = smov 0  }
  0x13 LB: > { %s409_s25 = sadd.s32 4294967295, %s623_s24   ;;  %s410_s26 = sadd.s32 4294967294, %s623_s24   ;;  %s623_s24 = sphi %s667_s24, %s23_s24   ;;  %s619_s23 = sphi %s665_s23, %s808_s23   ;;  %s615_s22 = sphi %s663_s22, %s807_s22   ;;  %s611_s0 = sphi %s661_s0, %s806_s0   ;;  %s607_s21 = sphi %s659_s21, %s805_s21   ;;  %s603_s20 = sphi %s657_s20, %s804_s20  }
  0x14   : > { %s35_s27 = sadd.s32 1, %s619_s23  ;;  %s112_s28 = sadd.s32 1, %s611_s0 }
  0x15   : > { %p37_p5 = scmp.ge.s32.totalorder %s35_s27, 2  ;;  %p122_p6 = scmp.ne.s32.totalorder %s611_s0, %s607_s21 }
  0x16   : > { %p123_p7 = scmp.eq.s32.totalorder %s409_s25, 1  ;;  %p128_p8 = scmp.ne.s32.totalorder %s607_s21, %s603_s20 }
  0x17   : > { %s810_s27 = smov (%p37_p5, %s35_s27), 0  ;;  %p129_p10 = scmp.eq.s32.totalorder %s410_s26, 1 }
  0x18   : > { %p697_p9 = por %p123_p7, %p122_p6  ;;  %s107_s30 = ssub.s32 %s619_s23, %s810_s27 }
  0x19   : > { %p413_p11 = scmp.ge.s32.totalorder %s623_s24, 1  ;;  %p110_p12 = scmp.eq.s32.totalorder %s107_s30, 0 }
  0x1a   : > { %p704_p13 = por %p129_p10, %p128_p8  ;;  %p160_p0 = scmp.lt.s32.totalorder %s623_s24, 3 }
  0x1b   : > { %s710_s6 = scalar_select %p110_p12, %s611_s0, %s112_s28  }
  0x1c   : > { %p161_p1 = pnand %p413_p11, %p160_p0 }
  0x1d   : > { %v519_v0 = vld [vmem:[%s799_s2] sm:$0xff] (!%p161_p1)   ;;  %v626_v1 = vmov (!%p161_p1), 0.0   ;;  %v520_v2 = vld [vmem:[%s799_s2 + $0x8] sm:$0xff] (!%p161_p1)   ;;  %vm627_vm0 = vmmov (!%p161_p1), 0   ;;  %v521_v3 = vld [vmem:[%s799_s2 + $0x10] sm:$0xff] (!%p161_p1)   ;;  %p183_p2 = scmp.lt.s32.totalorder (!%p161_p1), %s615_s22, 1  ;;  %v190_v7 = vlaneseq (!%p161_p1) }
  0x1e   : > { %164 = sbr.rel (%p161_p1) target bundleno = 604 (0x25c), region = 32  ;;  %441 = vmatprep.subr.bf16.mxu0 (!%p161_p1), %v626_v1  ;;  %457 = vmatprep.mubr.msk.bf16.mxu0 (!%p161_p1), %vm627_vm0, %v626_v1  ;;  %v522_v4 = vld [vmem:[%s799_s2 + $0x18] sm:$0xff] (!%p161_p1)   ;;  %v523_v5 = vld [vmem:[%s799_s2 + $0x20] sm:$0xff] (!%p161_p1)   ;;  %s189_s17 = sld [smem:[#allocation3 + %s615_s22]] (!%p161_p1)  ;;  %v524_v6 = vld [vmem:[%s799_s2 + $0x28] sm:$0xff] (!%p161_p1)  }
  0x1f   : > { %442 = vmatpush3.bf16.msra.mxu0 (!%p161_p1), %v519_v0  ;;  %v525_v8 = vld [vmem:[%s799_s2 + $0x30] sm:$0xff] (!%p161_p1)   ;;  %v191_v9 = vshrl.u32 (!%p161_p1), %v190_v7, 7  ;;  %v526_v11 = vld [vmem:[%s799_s2 + $0x38] sm:$0xff] (!%p161_p1)   ;;  %v416_v14 = vld [vmem:[%s800_s3] ss:$0 sm:$0xff] (!%p161_p1)  ;;  %s180_s14 = sand.u32 (!%p161_p1), 1, %s607_s21  }
  0x20   : > { %443 = vmatprep.subr.bf16.mxu0 (!%p161_p1), %v626_v1  ;;  %s414_s15 = sshll.u32 (!%p161_p1), %s180_s14, 3  ;;  %s429_s16 = sshll.u32 (!%p161_p1), %s615_s22, 7 }
  0x21   : > { %s325_s28 = scalar_lea.sflag (!%p161_p1), [#allocation5], %s180_s14 }
  0x23   : > { %444 = vmatpush3.bf16.msra.mxu0 (!%p161_p1), %v520_v2 }
  0x24   : > { %445 = vmatprep.subr.bf16.mxu0 (!%p161_p1), %v626_v1  ;;  %v196_v10 = vstv (!%p161_p1), %s189_s17  ;;  %s182_s17 = scalar_lea.vmem (!%p161_p1), [#allocation4], %s414_s15 }
  0x25   : > { %s184_s18 = scalar_select %p183_p2, %s615_s22, 1  ;;  %vm197_vm1 = vcmp.lt.s32.totalorder %v191_v9, %v196_v10 }
  0x26   : > { %vm425_vm2 = vmpackc.low %vm197_vm1, %vm197_vm1  ;;  %s628_s22 = smov [#allocation4]  }
  0x27   : > { %446 = vmatpush3.bf16.msra.mxu0 %v521_v3  ;;  %s415_s26 = sshll.u32 %s184_s18, 3  ;;  %s339_s18 = sshll.u32 %s182_s17, 4  ;;  %s752_s18 = int_to_ptr.vmem [resolvable:$true] %s339_s18 }
  0x28   : > { %447 = vmatprep.subr.bf16.mxu0 %v626_v1  ;;  %s186_s9 = scalar_lea.vmem %s798_s1, %s415_s26  ;;  %s750_s26 = scalar_lea.hbm %s801_s4, %s429_s16 }
  0x29   : > { %v195_v12 = vld [vmem:[%s186_s9] sm:$0xff]  ;;  %s543_s30 = scalar_lea.vmem %s752_s18, 128  ;;  %s547_s7 = sshll.u32 %s628_s22, 4  ;;  %s548_s7 = int_to_ptr.vmem [resolvable:$false] %s547_s7 }
  0x2a   : > { %v426_v13 = vpack.c.bf16 %v195_v12, %v195_v12  ;;  %p544_p3 = scmp.ne.s32.totalorder %s752_s18, %s543_s30  ;;  %s549_s8 = scalar_lea.vmem %s548_s7, 256 }
  0x2b   : > { %448 = vmatpush3.bf16.msra.mxu0 %v522_v4  ;;  %p550_p6 = scmp.lt.s32.totalorder %s752_s18, %s548_s7  ;;  %p551_p7 = scmp.lt.s32.totalorder %s549_s8, %s543_s30 }
  0x2c   : > { %449 = vmatprep.subr.bf16.mxu0 %v626_v1  ;;  %p545_p4 = pnand %p544_p3, %p697_p9 }
  0x2d   : > { %p552_p8 = por %p551_p7, %p550_p6 }
  0x2e   : > { %p546_p5 = pneg %p545_p4 }
  0x2f   : > { %450 = vmatpush3.bf16.msra.mxu0 %v523_v5 }
  0x30   : > { %451 = vmatprep.subr.bf16.mxu0 %v626_v1  ;;  %p553_p10 = pnand %p552_p8, %p546_p5 }
  0x33   : > { %452 = vmatpush3.bf16.msra.mxu0 %v524_v6 }
  0x34   : > { %453 = vmatprep.subr.bf16.mxu0 %v626_v1 }
  0x37   : > { %454 = vmatpush3.bf16.msra.mxu0 %v525_v8 }
  0x38   : > { %455 = vmatprep.subr.bf16.mxu0 %v626_v1 }
  0x3b   : > { %456 = vmatpush3.bf16.msra.mxu0 %v526_v11 }
  0x3e   : > { %458 = vmatmul.mubr.msk.bf16.vlgmr.msra.gmra.mrb[0].mxu0 %vm425_vm2, %v426_v13 }
 0x111   : > { %v307_v15 = vpop.f32.mrb[0].mxu0 }
 0x112   : > { %v308_v16 = vadd.f32 %v416_v14, %v307_v15  ;;  %v459_v17 = vpop.f32.mrb[1].mxu0 }
 0x113   : > { %v310_v18 = vpop.f32.mrb[2].mxu0 }
 0x114   : > { %313 = vmax.xlane.f32.xlu0 %v308_v16  ;;  %v460_v19 = vpop.f32.mrb[3].mxu0 }
 0x1a1   : > { %v314_v20 = vpop.xlane.xlu0 %313 }
 0x1a2   : > { %v315_v21 = vsub.f32 %v308_v16, %v314_v20 }
 0x1a4   : > { %v316_v22 = vmul.f32 1.442695, %v315_v21 }
 0x1a6   : > { %527 = vpow2.f32 %v316_v22 }
 0x1b0   : > { %v528_v23 = vpop.eup %527 }
 0x1b1   : > { %318 = vadd.xlane.f32.xlu0 %v528_v23 }
 0x23e   : > { %v319_v24 = vpop.xlane.xlu0 %318 }
 0x23f   : > { %529 = vlog2.f32 %v319_v24 }
 0x249   : > { %v530_v25 = vpop.eup %529 }
 0x24a   : > { %v321_v26 = vmul.f32 0.6931472, %v530_v25 }
 0x24c   : > { %v322_v27 = vsub.f32 %v315_v21, %v321_v26 }
 0x24e   : > { %323 = vst [vmem:[%s182_s17] sm:$0xff] %v322_v27 }
 0x24f   : > { %556 = shalt.err (!%p553_p10)
}
 0x250   : > { %s557_s9 = scalar_lea.hbm %s750_s26, 128  ;;  %s561_s12 = scalar_lea.hbm %s801_s4, 256 }
 0x251   : > { %p558_p11 = scmp.ne.s32.totalorder %s750_s26, %s557_s9  ;;  %p562_p1 = scmp.lt.u32.totalorder %s750_s26, %s801_s4 }
 0x252   : > { %p563_p2 = scmp.lt.u32.totalorder %s561_s12, %s557_s9  ;;  %p565_p4 = scmp.lt.u32.totalorder %s557_s9, %s750_s26 }
 0x253   : > { %p559_p12 = pnand %p558_p11, %p697_p9 }
 0x254   : > { %p564_p3 = por %p563_p2, %p562_p1 }
 0x255   : > { %p560_p0 = pneg %p559_p12 }
 0x256   : > { %p566_p5 = por %p565_p4, %p564_p3 }
 0x258   : > { %p567_p6 = pnand %p566_p5, %p560_p0 }
 0x25a   : > { %570 = shalt.err (!%p567_p6)
}
 0x25b   : > { %461 = dma.vmem_to_hbm [thread:$0]  (%p697_p9), %s752_s18, 128, %s750_s26, %s325_s28  }
 0x25c PF: > { %p467_p7 = scmp.ge.s32.totalorder %s623_s24, 2  ;;  %s351_s15 = sand.u32 1, %s603_s20  }
 0x25d   : > { %s352_s16 = scalar_lea.sflag [#allocation5], %s351_s15 }
 0x25e   : > { %p464_p8 = pnand %p467_p7, %p704_p13 }
 0x260   : > { %598 = dma.done.wait (!%p464_p8), %s352_s16, 128  }
 0x261   : > { %600 = vsyncadd (!%p464_p8), %s352_s16, 4294967168  ;;  %s23_s24 = sadd.s32 1, %s623_s24   ;;  %s804_s20 = smov %s607_s21 }
 0x262   : > { %p20_p10 = scmp.ge.s32.totalorder %s23_s24, 4   ;;  %s805_s21 = smov %s611_s0 }
 0x263   : > { %s806_s0 = smov %s710_s6  ;;  %s807_s22 = smov %s619_s23 }
 0x264   : > { %s808_s23 = smov %s810_s27  ;;  %22 = sbr.rel (!%p20_p10) target bundleno = 19 (0x13), region = 68 }
 0x26b   :  { %357 = vsyncpa [#allocation5], 1 }
 0x26c   :  { %359 = vsyncpa [#allocation5 + $0x1], 1 }

</bundles_post_ra>
